<compile_context>
chip_gen: v7x
topology: tpu7x:2x2x1
jax: 0.10.0
libtpu: 0.0.40
codegen_flags: <defaults>
</compile_context>

<pallas_src>
import functools

import jax
import jax.numpy as jnp
from jax import lax
from jax.experimental import pallas as pl
from jax.experimental.pallas import tpu as pltpu


# ----------------------------- Pallas kernel ------------------------------- #
def _complex_conv_kernel(x_ref, w_ref, b_ref, or_ref, oi_ref,
                         *, K, stride, out_rows, Wout, Cout):
    """One grid step = one (batch, output-row-tile).

    x_ref : (1, 2Cin, in_rows, W_pad) padded input slab, channels [real; imag]
    w_ref : (2Cout, 2F)  fused weights [[Wr,-Wi],[Wi,Wr]], tap-major columns
    b_ref : (2Cout, 1)   fused bias [br - bi ; br + bi] (f32)
    or_ref: (1, Cout, TP) real output, TP = out_rows * Wout (lane-dense)
    oi_ref: (1, Cout, TP) imag output
    """
    x = x_ref[0]                                   # (2Cin, in_rows, W_pad)
    c2in = x.shape[0]
    tp = out_rows * Wout

    # In-VMEM im2col: one shifted slab slice per filter tap, flattened to a
    # (2Cin, TP) row block; concatenated tap-major to match w_ref's columns.
    taps = []
    for kh in range(K):
        for kw in range(K):
            if stride == 1:
                sl = x[:, kh:kh + out_rows, kw:kw + Wout]
            else:
                # TODO(synk): strided in-kernel slice path is untested on-chip
                # for stride > 1 (test config uses stride=1).
                sl = lax.slice(
                    x, (0, kh, kw),
                    (c2in, kh + stride * (out_rows - 1) + 1,
                     kw + stride * (Wout - 1) + 1),
                    (1, stride, stride))
            taps.append(sl.reshape(c2in, tp))
    patches = jnp.concatenate(taps, axis=0)        # (2F, TP), lives in VMEM

    # Single fused MXU dot (f32 accumulate) + f32 bias add (v5e-safe).
    acc = jnp.dot(w_ref[...], patches, preferred_element_type=jnp.float32)
    acc = acc + b_ref[...]
    or_ref[0] = acc[:Cout].astype(or_ref.dtype)
    oi_ref[0] = acc[Cout:].astype(oi_ref.dtype)


# ------------------------------ Tiling logic -------------------------------- #
def _vmem_limit_bytes():
    """Scoped-VMEM limit: ~60% of physical VMEM, capped at 64 MiB (safe on
    v7x's 64 MiB per-TC VMEM, larger than the 32 MiB default on v5e/v6e)."""
    cap = 64 * 1024 * 1024
    try:
        cap = int(pltpu.get_tpu_info().vmem_capacity_bytes)
    except Exception:
        pass
    return max(32 * 1024 * 1024, min(int(cap * 0.6), 64 * 1024 * 1024))


def _choose_row_tile(N, Hout, Wout, C2in, C2out, F2, W_pad, K, stride,
                     bytes_x, budget_bytes):
    """Largest output-row tile TR (dividing Hout, TR*Wout % 128 == 0 unless
    TR == Hout) whose per-step VMEM footprint fits the budget; prefers >= 2
    total grid steps so both v7x TensorCores get work."""
    def footprint(tr):
        tp = tr * Wout
        in_rows = (tr - 1) * stride + K
        slab = 2 * C2in * in_rows * W_pad * bytes_x     # input slab, 2-deep pipe
        wgt = 2 * C2out * F2 * bytes_x                  # fused weights, 2-deep
        outs = 2 * 2 * (C2out // 2) * tp * 4            # real+imag f32 outputs
        patch = F2 * tp * bytes_x                       # in-kernel im2col matrix
        acc = C2out * tp * 4                            # f32 accumulator value
        return slab + wgt + outs + patch + acc

    cands = sorted({r for r in range(1, Hout + 1)
                    if Hout % r == 0 and ((r * Wout) % 128 == 0 or r == Hout)})
    fitting = [r for r in cands if footprint(r) <= budget_bytes]
    if not fitting:
        # TODO(synk): for very large Cin*K*K add a contraction grid axis over
        # 2F with a (2Cout, TP) accumulator + pl.when init/writeback instead of
        # shrinking TR further.
        return cands[0]
    tr = fitting[-1]
    if N * (Hout // tr) < 2:                            # v7x: 2 TensorCores
        smaller = [r for r in fitting if Hout // r >= 2]
        if smaller:
            tr = smaller[-1]
    return tr


# ------------------------------ Glue (JAX) --------------------------------- #
@functools.partial(
    jax.jit, static_argnames=("kernel_size", "stride", "padding", "use_bf16"))
def complex_conv2d(x, w_real, w_imag, b_real, b_imag,
                   kernel_size, stride=1, padding=0, use_bf16=False):
    """Complex Conv2d: x complex64 NCHW, weights (Cout, Cin, K, K) real f32."""
    K = int(kernel_size)
    stride = int(stride)
    padding = int(padding)
    N, Cin, H, W = x.shape
    Cout = w_real.shape[0]
    F = Cin * K * K
    F2 = 2 * F
    C2in = 2 * Cin
    C2out = 2 * Cout

    cdtype = jnp.bfloat16 if use_bf16 else jnp.float32
    bytes_x = 2 if use_bf16 else 4

    # Stacked [real ; imag] channels, spatially padded once (cheap: 1x input).
    xr = jnp.real(x).astype(jnp.float32)
    xi = jnp.imag(x).astype(jnp.float32)
    x_cat = jnp.concatenate([xr, xi], axis=1).astype(cdtype)   # (N, 2Cin, H, W)
    x_pad = jnp.pad(x_cat,
                    ((0, 0), (0, 0), (padding, padding), (padding, padding)))
    H_pad, W_pad = H + 2 * padding, W + 2 * padding
    Hout = (H_pad - K) // stride + 1
    Wout = (W_pad - K) // stride + 1
    P = Hout * Wout

    vmem_limit = _vmem_limit_bytes()
    TR = _choose_row_tile(N, Hout, Wout, C2in, C2out, F2, W_pad, K, stride,
                          bytes_x, int(vmem_limit * 0.75))
    T = Hout // TR
    TP = TR * Wout
    in_rows = (TR - 1) * stride + K

    # Overlapping row slabs (halo rows only): expansion ~(TR+K-1)/TR (= 1.0x
    # when T == 1), negligible vs the K^2-expanded im2col this replaces.
    # TODO(synk): for huge images, a manual halo DMA from a pl.ANY HBM ref
    # would remove even this wrapper-side slab copy.
    slabs = [lax.slice(x_pad, (0, 0, t * TR * stride, 0),
                       (N, C2in, t * TR * stride + in_rows, W_pad))
             for t in range(T)]
    slabs = jnp.stack(slabs, axis=1).reshape(N * T, C2in, in_rows, W_pad)

    # Fused complex weight with tap-major columns: col = (kh*K + kw)*2Cin + c2.
    #   real rows: [ Wr, -Wi ] ; imag rows: [ Wi, Wr ]
    wr_t = w_real.astype(jnp.float32).transpose(2, 3, 0, 1)    # (K, K, Cout, Cin)
    wi_t = w_imag.astype(jnp.float32).transpose(2, 3, 0, 1)
    w_f = jnp.concatenate(
        [jnp.concatenate([wr_t, -wi_t], axis=-1),
         jnp.concatenate([wi_t, wr_t], axis=-1)], axis=2)      # (K, K, 2Cout, 2Cin)
    w_fused = w_f.transpose(2, 0, 1, 3).reshape(C2out, F2).astype(cdtype)
    b_fused = jnp.concatenate(
        [b_real - b_imag, b_real + b_imag]).astype(jnp.float32)[:, None]

    kernel = functools.partial(_complex_conv_kernel, K=K, stride=stride,
                               out_rows=TR, Wout=Wout, Cout=Cout)

    out_r, out_i = pl.pallas_call(
        kernel,
        out_shape=(jax.ShapeDtypeStruct((N, Cout, P), jnp.float32),
                   jax.ShapeDtypeStruct((N, Cout, P), jnp.float32)),
        grid_spec=pltpu.PrefetchScalarGridSpec(
            num_scalar_prefetch=0,
            grid=(N, T),
            in_specs=[
                # Input slab: full spatial extent of the slab (last two dims
                # equal the full array dims -> no (8,128) constraint issue).
                pl.BlockSpec((1, C2in, in_rows, W_pad),
                             lambda n, t: (n * T + t, 0, 0, 0)),
                # Fused weights / bias: resident across the whole grid.
                pl.BlockSpec((C2out, F2), lambda n, t: (0, 0)),
                pl.BlockSpec((C2out, 1), lambda n, t: (0, 0)),
            ],
            out_specs=[
                pl.BlockSpec((1, Cout, TP), lambda n, t: (n, 0, t)),
                pl.BlockSpec((1, Cout, TP), lambda n, t: (n, 0, t)),
            ],
        ),
        compiler_params=pltpu.CompilerParams(
            dimension_semantics=("parallel", "parallel"),
            vmem_limit_bytes=vmem_limit),
    )(slabs, w_fused, b_fused)

    # (N, Cout, P) -> NCHW; reshape is free (P already row-major over H,W).
    out_r = out_r.reshape(N, Cout, Hout, Wout)
    out_i = out_i.reshape(N, Cout, Hout, Wout)
    return lax.complex(out_r, out_i)


# ------------------------- Parameter initialization ------------------------ #
def init_complex_conv2d_params(key, in_channels, out_channels, kernel_size):
    """Mirror the module: kaiming_normal(fan_out, relu) weights, PyTorch-default
    uniform biases."""
    k = kernel_size
    k_wr, k_wi, k_br, k_bi = jax.random.split(key, 4)
    fan_out = out_channels * k * k
    std = (2.0 / fan_out) ** 0.5
    w_real = std * jax.random.normal(k_wr, (out_channels, in_channels, k, k),
                                     dtype=jnp.float32)
    w_imag = std * jax.random.normal(k_wi, (out_channels, in_channels, k, k),
                                     dtype=jnp.float32)
    fan_in = in_channels * k * k
    bound = 1.0 / (fan_in ** 0.5)
    b_real = jax.random.uniform(k_br, (out_channels,), jnp.float32, -bound, bound)
    b_imag = jax.random.uniform(k_bi, (out_channels,), jnp.float32, -bound, bound)
    return w_real, w_imag, b_real, b_imag


# ------------------------------- Reference --------------------------------- #
def _ref_complex_conv2d(x, w_real, w_imag, b_real, b_imag, stride, padding):
    def conv(inp, w, b):
        out = lax.conv_general_dilated(
            inp, w, window_strides=(stride, stride),
            padding=[(padding, padding), (padding, padding)],
            dimension_numbers=("NCHW", "OIHW", "NCHW"))
        return out + b[None, :, None, None]
    xr = jnp.real(x).astype(jnp.float32)
    xi = jnp.imag(x).astype(jnp.float32)
    real = conv(xr, w_real, b_real) - conv(xi, w_imag, b_imag)
    imag = conv(xi, w_real, b_real) + conv(xr, w_imag, b_imag)
    return lax.complex(real, imag)


if __name__ == "__main__":
    key = jax.random.PRNGKey(0)
    k_x_r, k_x_i, k_params = jax.random.split(key, 3)

    # Small shapes: batch=2, in_channels=4, out_channels=8, spatial=16,
    # kernel_size=3, stride=1, padding=1.
    N, Cin, H, W = 2, 4, 16, 16
    Cout, K, stride, padding = 8, 3, 1, 1

    x = lax.complex(
        jax.random.normal(k_x_r, (N, Cin, H, W), dtype=jnp.float32),
        jax.random.normal(k_x_i, (N, Cin, H, W), dtype=jnp.float32),
    )

    w_real, w_imag, b_real, b_imag = init_complex_conv2d_params(
        k_params, Cin, Cout, K)

    out = complex_conv2d(x, w_real, w_imag, b_real, b_imag,
                         kernel_size=K, stride=stride, padding=padding)
    out = jax.block_until_ready(out)

    ref = _ref_complex_conv2d(x, w_real, w_imag, b_real, b_imag, stride, padding)
    ref = jax.block_until_ready(ref)

    assert out.shape == (N, Cout, H, W), out.shape
    assert out.dtype == jnp.complex64, out.dtype
    assert jnp.allclose(jnp.real(out), jnp.real(ref), atol=1e-4, rtol=1e-4)
    assert jnp.allclose(jnp.imag(out), jnp.imag(ref), atol=1e-4, rtol=1e-4)

    # bf16 fast path (halved DMA bytes + bf16 MXU); looser tolerance by design.
    out_bf16 = jax.block_until_ready(
        complex_conv2d(x, w_real, w_imag, b_real, b_imag,
                       kernel_size=K, stride=stride, padding=padding,
                       use_bf16=True))
    assert jnp.allclose(jnp.real(out_bf16), jnp.real(ref), atol=1e-1, rtol=1e-1)
    assert jnp.allclose(jnp.imag(out_bf16), jnp.imag(ref), atol=1e-1, rtol=1e-1)

    print("KERNEL_OK")
</pallas_src>

<mosaic_0001>
module attributes {stable_mosaic.version = 11 : i64} {
  func.func @_complex_conv_kernel(%arg0: i32, %arg1: i32, %arg2: memref<1x8x18x18xf32, #tpu.memory_space<vmem>>, %arg3: memref<16x72xf32, #tpu.memory_space<vmem>>, %arg4: memref<16x1xf32, #tpu.memory_space<vmem>>, %arg5: memref<1x8x256xf32, #tpu.memory_space<vmem>>, %arg6: memref<1x8x256xf32, #tpu.memory_space<vmem>>) attributes {dimension_semantics = [#tpu.dimension_semantics<parallel>, #tpu.dimension_semantics<parallel>], iteration_bounds = array<i64: 2, 1>, scalar_prefetch = 0 : i64, scratch_operands = 0 : i64, tpu.core_type = #tpu.core_type<tc>, window_params = [{transform_indices = @transform_0, window_bounds = array<i64: 1, 8, 18, 18>}, {pipeline_mode = #tpu.pipeline_mode<synchronous>, transform_indices = @transform_1, window_bounds = array<i64: 16, 72>}, {pipeline_mode = #tpu.pipeline_mode<synchronous>, transform_indices = @transform_2, window_bounds = array<i64: 16, 1>}, {transform_indices = @transform_3, window_bounds = array<i64: 1, 8, 256>}, {transform_indices = @transform_4, window_bounds = array<i64: 1, 8, 256>}]} {
    %c0 = arith.constant 0 : index
    %c0_0 = arith.constant 0 : index
    %c0_1 = arith.constant 0 : index
    %c0_2 = arith.constant 0 : index
    %0 = vector.load %arg2[%c0, %c0_0, %c0_1, %c0_2] : memref<1x8x18x18xf32, #tpu.memory_space<vmem>>, vector<1x8x18x18xf32>
    %1 = vector.shape_cast %0 : vector<1x8x18x18xf32> to vector<8x18x18xf32>
    %2 = vector.extract_strided_slice %1 {offsets = [0, 0, 0], sizes = [8, 16, 16], strides = [1, 1, 1]} : vector<8x18x18xf32> to vector<8x16x16xf32>
    %3 = vector.shape_cast %2 : vector<8x16x16xf32> to vector<8x256xf32>
    %4 = vector.extract_strided_slice %1 {offsets = [0, 0, 1], sizes = [8, 16, 16], strides = [1, 1, 1]} : vector<8x18x18xf32> to vector<8x16x16xf32>
    %5 = vector.shape_cast %4 : vector<8x16x16xf32> to vector<8x256xf32>
    %6 = vector.extract_strided_slice %1 {offsets = [0, 0, 2], sizes = [8, 16, 16], strides = [1, 1, 1]} : vector<8x18x18xf32> to vector<8x16x16xf32>
    %7 = vector.shape_cast %6 : vector<8x16x16xf32> to vector<8x256xf32>
    %8 = vector.extract_strided_slice %1 {offsets = [0, 1, 0], sizes = [8, 16, 16], strides = [1, 1, 1]} : vector<8x18x18xf32> to vector<8x16x16xf32>
    %9 = vector.shape_cast %8 : vector<8x16x16xf32> to vector<8x256xf32>
    %10 = vector.extract_strided_slice %1 {offsets = [0, 1, 1], sizes = [8, 16, 16], strides = [1, 1, 1]} : vector<8x18x18xf32> to vector<8x16x16xf32>
    %11 = vector.shape_cast %10 : vector<8x16x16xf32> to vector<8x256xf32>
    %12 = vector.extract_strided_slice %1 {offsets = [0, 1, 2], sizes = [8, 16, 16], strides = [1, 1, 1]} : vector<8x18x18xf32> to vector<8x16x16xf32>
    %13 = vector.shape_cast %12 : vector<8x16x16xf32> to vector<8x256xf32>
    %14 = vector.extract_strided_slice %1 {offsets = [0, 2, 0], sizes = [8, 16, 16], strides = [1, 1, 1]} : vector<8x18x18xf32> to vector<8x16x16xf32>
    %15 = vector.shape_cast %14 : vector<8x16x16xf32> to vector<8x256xf32>
    %16 = vector.extract_strided_slice %1 {offsets = [0, 2, 1], sizes = [8, 16, 16], strides = [1, 1, 1]} : vector<8x18x18xf32> to vector<8x16x16xf32>
    %17 = vector.shape_cast %16 : vector<8x16x16xf32> to vector<8x256xf32>
    %18 = vector.extract_strided_slice %1 {offsets = [0, 2, 2], sizes = [8, 16, 16], strides = [1, 1, 1]} : vector<8x18x18xf32> to vector<8x16x16xf32>
    %19 = vector.shape_cast %18 : vector<8x16x16xf32> to vector<8x256xf32>
    %20 = tpu.concatenate %3, %5, %7, %9, %11, %13, %15, %17, %19 in 0 : vector<8x256xf32>, vector<8x256xf32>, vector<8x256xf32>, vector<8x256xf32>, vector<8x256xf32>, vector<8x256xf32>, vector<8x256xf32>, vector<8x256xf32>, vector<8x256xf32> -> vector<72x256xf32>
    %c0_3 = arith.constant 0 : index
    %c0_4 = arith.constant 0 : index
    %21 = vector.load %arg3[%c0_3, %c0_4] : memref<16x72xf32, #tpu.memory_space<vmem>>, vector<16x72xf32>
    %cst = arith.constant dense<0.000000e+00> : vector<16x256xf32>
    %22 = tpu.matmul %21, %20, %cst {dimension_numbers = #tpu.dot_dimension_numbers<[1], [0], [0], [1], [0, 0, 1, 1], [], []>} : vector<16x72xf32>, vector<72x256xf32>, vector<16x256xf32> -> vector<16x256xf32>
    %c0_5 = arith.constant 0 : index
    %c0_6 = arith.constant 0 : index
    %23 = vector.load %arg4[%c0_5, %c0_6] : memref<16x1xf32, #tpu.memory_space<vmem>>, vector<16x1xf32>
    %24 = vector.broadcast %23 : vector<16x1xf32> to vector<16x256xf32>
    %25 = arith.addf %22, %24 : vector<16x256xf32>
    %26 = vector.extract_strided_slice %25 {offsets = [0, 0], sizes = [8, 256], strides = [1, 1]} : vector<16x256xf32> to vector<8x256xf32>
    %c0_7 = arith.constant 0 : index
    %c0_8 = arith.constant 0 : index
    %c0_9 = arith.constant 0 : index
    %27 = vector.load %arg5[%c0_7, %c0_8, %c0_9] : memref<1x8x256xf32, #tpu.memory_space<vmem>>, vector<1x8x256xf32>
    %28 = vector.shape_cast %27 : vector<1x8x256xf32> to vector<8x256xf32>
    %29 = vector.shape_cast %26 : vector<8x256xf32> to vector<1x8x256xf32>
    tpu.vector_store %arg5[%c0_7, %c0_8, %c0_9], %29 {strides = array<i32>} : memref<1x8x256xf32, #tpu.memory_space<vmem>>, vector<1x8x256xf32>,
    %30 = vector.extract_strided_slice %25 {offsets = [8, 0], sizes = [8, 256], strides = [1, 1]} : vector<16x256xf32> to vector<8x256xf32>
    %c0_10 = arith.constant 0 : index
    %c0_11 = arith.constant 0 : index
    %c0_12 = arith.constant 0 : index
    %31 = vector.load %arg6[%c0_10, %c0_11, %c0_12] : memref<1x8x256xf32, #tpu.memory_space<vmem>>, vector<1x8x256xf32>
    %32 = vector.shape_cast %31 : vector<1x8x256xf32> to vector<8x256xf32>
    %33 = vector.shape_cast %30 : vector<8x256xf32> to vector<1x8x256xf32>
    tpu.vector_store %arg6[%c0_10, %c0_11, %c0_12], %33 {strides = array<i32>} : memref<1x8x256xf32, #tpu.memory_space<vmem>>, vector<1x8x256xf32>,
    return
  }
  func.func @transform_0(%arg0: i32, %arg1: i32) -> (i32, i32, i32, i32) {
    %c1_i32 = arith.constant 1 : i32
    %0 = arith.muli %arg0, %c1_i32 : i32
    %1 = arith.addi %0, %arg1 : i32
    %c0_i32 = arith.constant 0 : i32
    %c0_i32_0 = arith.constant 0 : i32
    %c0_i32_1 = arith.constant 0 : i32
    %c0_i32_2 = arith.constant 0 : i32
    return %1, %c0_i32, %c0_i32_0, %c0_i32_1 : i32, i32, i32, i32
  }
  func.func @transform_1(%arg0: i32, %arg1: i32) -> (i32, i32) {
    %c0_i32 = arith.constant 0 : i32
    %c0_i32_0 = arith.constant 0 : i32
    %c0_i32_1 = arith.constant 0 : i32
    return %c0_i32, %c0_i32_0 : i32, i32
  }
  func.func @transform_2(%arg0: i32, %arg1: i32) -> (i32, i32) {
    %c0_i32 = arith.constant 0 : i32
    %c0_i32_0 = arith.constant 0 : i32
    %c0_i32_1 = arith.constant 0 : i32
    return %c0_i32, %c0_i32_0 : i32, i32
  }
  func.func @transform_3(%arg0: i32, %arg1: i32) -> (i32, i32, i32) {
    %c0_i32 = arith.constant 0 : i32
    %c0_i32_0 = arith.constant 0 : i32
    return %arg0, %c0_i32, %arg1 : i32, i32, i32
  }
  func.func @transform_4(%arg0: i32, %arg1: i32) -> (i32, i32, i32) {
    %c0_i32 = arith.constant 0 : i32
    %c0_i32_0 = arith.constant 0 : i32
    return %arg0, %c0_i32, %arg1 : i32, i32, i32
  }
}

</mosaic_0001>

<bundles_post_ra>
// kernel: custom-call.1
= control target key start
LH: loop header
LB: loop body
LE: loop exit
PB: predicated region body
PF: predicated region fallthrough
CT: control target
= control target key end

     0   :  { %s59_s0 = inlined_call_operand.hbm [shape: c64[2,4,16,16], index: 0, kind: input, shape index: {}]   ;;  %s60_s1 = inlined_call_operand.vmem [shape: f32[2,4,16,16], index: 1, kind: output, shape index: {}]  }
   0x1   :  { %s2_s8 = scalar_lea.hbm %s59_s0, 2048 }
   0x2   :  { %3 = vsyncpa [#allocation0], 0  ;;  %s4_s11 = sshll.u32 %s60_s1, 4  ;;  %s34_s14 = scalar_lea.hbm %s59_s0, 4096  ;;  %s5_s11 = int_to_ptr.vmem [resolvable:$true] %s4_s11 }
   0x3   :  { %p11_p0 = scmp.ne.s32.totalorder %s2_s8, %s34_s14  ;;  %p13_p1 = scmp.lt.u32.totalorder %s2_s8, %s59_s0 }
   0x4   :  { %p14_p2 = scmp.lt.u32.totalorder %s34_s14, %s34_s14  ;;  %p16_p4 = scmp.lt.u32.totalorder %s34_s14, %s2_s8 }
   0x6   :  { %p15_p3 = por %p14_p2, %p13_p1 }
   0x8   :  { %p17_p5 = por %p16_p4, %p15_p3 }
   0xa   :  { %p18_p6 = pnand %p17_p5, %p11_p0 }
   0xc   :  { %21 = shalt.err (!%p18_p6)  }
   0xd   :  { %s22_s17 = scalar_lea.vmem %s5_s11, 2048  ;;  %p27_p8 = scmp.lt.s32.totalorder %s5_s11, %s5_s11 }
   0xe   :  { %p23_p7 = scmp.ne.s32.totalorder %s5_s11, %s22_s17  ;;  %p28_p9 = scmp.lt.s32.totalorder %s22_s17, %s22_s17 }
  0x10   :  { %p29_p10 = por %p28_p9, %p27_p8 }
  0x12   :  { %p30_p11 = pnand %p29_p10, %p23_p7 }
  0x14   :  { %33 = shalt.err (!%p30_p11)  }
  0x15   :  { %7 = dma.hbm_to_vmem [thread:$0]  %s2_s8, 2048, %s5_s11, [#allocation0] }
  0x16   :  { %35 = dma.done.wait [#allocation0], 2048  }
  0x17   :  { %36 = vsyncadd [#allocation0], 4294965248 }
  0x18   :  { %9 = vsyncpa [#allocation0], 1 }

// kernel: custom-call
= control target key start
LH: loop header
LB: loop body
LE: loop exit
PB: predicated region body
PF: predicated region fallthrough
CT: control target
= control target key end

     0   :  { %2 = vsyncpa [#allocation0], 0  ;;  %s61_s0 = inlined_call_operand.hbm [shape: c64[2,4,16,16], index: 0, kind: input, shape index: {}]   ;;  %s62_s1 = inlined_call_operand.vmem [shape: f32[2,4,16,16], index: 1, kind: output, shape index: {}]  }
   0x1   :  { %s3_s8 = sshll.u32 %s62_s1, 4  ;;  %s9_s11 = scalar_lea.hbm %s61_s0, 2048  ;;  %s4_s8 = int_to_ptr.vmem [resolvable:$true] %s3_s8 }
   0x2   :  { %p10_p0 = scmp.ne.s32.totalorder %s61_s0, %s9_s11  ;;  %s11_s16 = scalar_lea.hbm %s61_s0, 4096 }
   0x3   :  { %p12_p1 = scmp.lt.u32.totalorder %s11_s16, %s9_s11  ;;  %p13_p2 = scmp.lt.u32.totalorder %s9_s11, %s61_s0 }
   0x5   :  { %p14_p3 = por %p13_p2, %p12_p1 }
   0x7   :  { %p15_p4 = pnand %p14_p3, %p10_p0 }
   0x9   :  { %18 = shalt.err (!%p15_p4)  }
   0xa   :  { %s19_s1 = scalar_lea.vmem %s4_s8, 2048  ;;  %p24_p6 = scmp.lt.s32.totalorder %s4_s8, %s4_s8 }
   0xb   :  { %p20_p5 = scmp.ne.s32.totalorder %s4_s8, %s19_s1  ;;  %p25_p7 = scmp.lt.s32.totalorder %s19_s1, %s19_s1 }
   0xd   :  { %p26_p8 = por %p25_p7, %p24_p6 }
   0xf   :  { %p27_p9 = pnand %p26_p8, %p20_p5 }
  0x11   :  { %30 = shalt.err (!%p27_p9)  }
  0x12   :  { %6 = dma.hbm_to_vmem [thread:$0]  %s61_s0, 2048, %s4_s8, [#allocation0] }
  0x13   :  { %31 = dma.done.wait [#allocation0], 2048  }
  0x14   :  { %32 = vsyncadd [#allocation0], 4294965248 }
  0x15   :  { %8 = vsyncpa [#allocation0], 1 }

// kernel: custom-call.2
= control target key start
LH: loop header
LB: loop body
LE: loop exit
PB: predicated region body
PF: predicated region fallthrough
CT: control target
= control target key end

     0   :  { %s126_s0 = inlined_call_operand.vmem [shape: f32[2,8,16,16], index: 0, kind: input, shape index: {}]   ;;  %s127_s1 = inlined_call_operand.vmem [shape: f32[2,8,16,16], index: 1, kind: input, shape index: {}]   ;;  %s128_s2 = inlined_call_operand.hbm [shape: c64[2,8,16,16], index: 2, kind: output, shape index: {}]  }
   0x1   :  { %s87_s11 = scalar_lea.hbm %s128_s2, 4096 }
   0x2   :  { %4 = vsyncpa [#allocation0], 0  ;;  %s5_s14 = sshll.u32 %s126_s0, 4  ;;  %s6_s14 = int_to_ptr.vmem [resolvable:$true] %s5_s14 }
   0x3   :  { %s18_s15 = scalar_lea.vmem %s6_s14, 4096  ;;  %p23_p1 = scmp.lt.s32.totalorder %s6_s14, %s6_s14 }
   0x4   :  { %p19_p0 = scmp.ne.s32.totalorder %s6_s14, %s18_s15  ;;  %p24_p2 = scmp.lt.s32.totalorder %s18_s15, %s18_s15 }
   0x6   :  { %p25_p3 = por %p24_p2, %p23_p1 }
   0x8   :  { %p26_p4 = pnand %p25_p3, %p19_p0 }
   0xa   :  { %29 = shalt.err (!%p26_p4)  }
   0xb   :  { %p31_p5 = scmp.ne.s32.totalorder %s128_s2, %s87_s11  ;;  %s32_s0 = scalar_lea.hbm %s128_s2, 8192 }
   0xc   :  { %p33_p6 = scmp.lt.u32.totalorder %s32_s0, %s87_s11  ;;  %p34_p7 = scmp.lt.u32.totalorder %s87_s11, %s128_s2 }
   0xe   :  { %p35_p8 = por %p34_p7, %p33_p6 }
  0x10   :  { %p36_p9 = pnand %p35_p8, %p31_p5 }
  0x12   :  { %39 = shalt.err (!%p36_p9)  }
  0x13   :  { %8 = dma.vmem_to_hbm [thread:$0]  %s6_s14, 4096, %s128_s2, [#allocation0] }
  0x14   :  { %65 = dma.done.wait [#allocation0], 4096  }
  0x15   :  { %66 = vsyncadd [#allocation0], 4294963200 }
  0x16   :  { %10 = vsyncpa [#allocation0], 1 }
  0x17   :  { %11 = vsyncpa [#allocation1], 0  ;;  %s12_s28 = sshll.u32 %s127_s1, 4  ;;  %s13_s28 = int_to_ptr.vmem [resolvable:$true] %s12_s28 }
  0x18   :  { %s40_s29 = scalar_lea.vmem %s13_s28, 4096  ;;  %p45_p11 = scmp.lt.s32.totalorder %s13_s28, %s13_s28 }
  0x19   :  { %p41_p10 = scmp.ne.s32.totalorder %s13_s28, %s40_s29  ;;  %p46_p12 = scmp.lt.s32.totalorder %s40_s29, %s40_s29 }
  0x1b   :  { %p47_p13 = por %p46_p12, %p45_p11 }
  0x1d   :  { %p48_p0 = pnand %p47_p13, %p41_p10 }
  0x1f   :  { %51 = shalt.err (!%p48_p0)  }
  0x20   :  { %p53_p1 = scmp.ne.s32.totalorder %s87_s11, %s32_s0  ;;  %p56_p2 = scmp.lt.u32.totalorder %s32_s0, %s32_s0 }
  0x22   :  { %p57_p3 = por %p56_p2, %p34_p7 }
  0x24   :  { %p59_p4 = por %p57_p3, %p33_p6 }
  0x26   :  { %p60_p5 = pnand %p59_p4, %p53_p1 }
  0x28   :  { %63 = shalt.err (!%p60_p5)  }
  0x29   :  { %15 = dma.vmem_to_hbm [thread:$0]  %s13_s28, 4096, %s87_s11, [#allocation1] }
  0x2a   :  { %67 = dma.done.wait [#allocation1], 4096  }
  0x2b   :  { %68 = vsyncadd [#allocation1], 4294963200 }
  0x2c   :  { %17 = vsyncpa [#allocation1], 1 }

// kernel: complex_conv2d.1
= control target key start
LH: loop header
LB: loop body
LE: loop exit
PB: predicated region body
PF: predicated region fallthrough
CT: control target
= control target key end

     0   :  { %s4460_s15 = smov 0   ;;  %s4462_s16 = smov 0   ;;  %s6660_s0 = inlined_call_operand.vmem [shape: f32[2,8,18,18], index: 0, kind: input, shape index: {}]   ;;  %s6661_s1 = inlined_call_operand.vmem [shape: f32[16,72], index: 1, kind: input, shape index: {}]   ;;  %s6662_s2 = inlined_call_operand.vmem [shape: f32[16,1], index: 2, kind: input, shape index: {}]   ;;  %s6663_s3 = inlined_call_operand.vmem [shape: f32[2,8,256], index: 3, kind: output, shape index: {0}]   ;;  %s6664_s4 = inlined_call_operand.vmem [shape: f32[2,8,256], index: 4, kind: output, shape index: {1}]  }
   0x1   :  { %s4464_s17 = smov 0  }
   0x2 LB: > { %s27_s18 = sadd.s32 1, %s4416_s16  ;;  %p4024_p0 = scmp.ge.s32.totalorder %s4420_s17, 1  ;;  %s4420_s17 = sphi %s4464_s17, %s15_s17   ;;  %s4416_s16 = sphi %s4462_s16, %s6983_s16   ;;  %s4412_s15 = sphi %s4460_s15, %s6982_s15  }
   0x3   : > { %p29_p1 = scmp.ge.s32.totalorder %s27_s18, 2  ;;  %p185_p2 = scmp.lt.s32.totalorder %s4420_s17, 3 }
   0x5   : > { %s6985_s18 = smov (%p29_p1, %s27_s18), 0  ;;  %p186_p3 = pnand %p4024_p0, %p185_p2 }
   0x7   : > { %189 = sbr.rel (%p186_p3) target bundleno = 791 (0x317), region = 32 }
   0xe   : > { %p226_p4 = scmp.lt.s32.totalorder %s4412_s15, 1  ;;  %v281_v0 = vlaneseq  ;;  %v4422_v1 = vmov 1983009808   ;;  %v4423_v3 = vmov 1934713408   ;;  %s4424_s23 = smov 127  }
   0xf   : > { %v279_v2 = vunpack.c.l.s4 %v4422_v1  ;;  %v343_v4 = vunpack.c.l.s4 %v4423_v3  ;;  %s4425_s24 = smov 48   ;;  %s4426_s25 = smov 16   ;;  %vm1429_vm0 = vcmask 1046528   ;;  %vm2608_vm1 = vcmask 1045504  }
  0x10   : > { %s6987_s15 = smov (!%p226_p4, %s4412_s15), 1  ;;  %v282_v6 = vshrl.u32 %v281_v0, 7  ;;  %s4427_s26 = smov 32   ;;  %vm604_vm2 = vcmask 130048   ;;  %vm606_vm3 = vcmask 261120   ;;  %vm608_vm4 = vcmask 392192  }
  0x11   : > { %v280_v5 = vunpack.c.0.s8 %v279_v2  ;;  %s4062_s19 = smul.u32 192, %s6987_s15  ;;  %v344_v7 = vunpack.c.0.s8 %v343_v4  ;;  %s4428_s27 = smov 64   ;;  %vm610_vm5 = vcmask 523264   ;;  %vm612_vm6 = vcmask 654336  }
  0x12   : > { %s4429_s28 = smov 80   ;;  %s4430_s29 = smov 96   ;;  %vm614_vm7 = vcmask 785408   ;;  %vm616_vm8 = vcmask 916480   ;;  %vm3801_vm9 = vcmask 588800  }
  0x13   : > { %s4484_s22 = scalar_lea.vmem %s6660_s0, %s4062_s19  ;;  %v4495_v11 = vsub.s32 %v280_v5, %v282_v6  ;;  %v4531_v23 = vsub.s32 %v344_v7, %v282_v6  ;;  %s4431_s30 = smov 112  }
  0x14   : > { %v4487_v8 = vld [vmem:[%s4484_s22] sm:$0xff]  ;;  %v4490_v9 = vld [vmem:[%s4484_s22 + $0x8] sm:$0xff]  ;;  %v4493_v10 = vld [vmem:[%s4484_s22 + $0x18] sm:$0xff]  ;;  %s4432_s5 = smov 126   ;;  %s4034_s14 = sshll.u32 %s6987_s15, 4 }
  0x15   : > { %6769 = vst [vmem:[#allocation2_spill] sm:$0xff] %v4493_v10  ;;  %641 = vrot.lane.b32.xlu1 %v4487_v8, %s4424_s23  ;;  %643 = vrot.lane.b32.xlu0 %v4490_v9, %s4424_s23  ;;  %v4502_v12 = vld [vmem:[%s4484_s22 + $0x20] sm:$0xff]  ;;  %v4505_v13 = vld [vmem:[%s4484_s22 + $0x30] sm:$0xff]  ;;  %s240_s21 = scalar_lea.vmem %s6663_s3, %s4034_s14 }
  0x16   : > { %v4508_v14 = vld [vmem:[%s4484_s22 + $0x38] sm:$0xff]  ;;  %v4511_v15 = vld [vmem:[%s4484_s22 + $0x48] sm:$0xff]  ;;  %v4514_v16 = vld [vmem:[%s4484_s22 + $0x50] sm:$0xff]  ;;  %v276_v17 = vcombine.low %v4487_v8, %v4505_v13  ;;  %v277_v18 = vcombine.high %v4487_v8, %v4505_v13 }
  0x17   : > { %6770 = vst [vmem:[#allocation3_spill] sm:$0xff] %v4511_v15  ;;  %v4521_v19 = vld [vmem:[%s4484_s22 + $0x60] sm:$0xff]  ;;  %v4524_v20 = vld [vmem:[%s4484_s22 + $0x68] sm:$0xff]  ;;  %v4527_v21 = vld [vmem:[%s4484_s22 + $0x78] sm:$0xff]  ;;  %v292_v22 = vcombine.low %v4493_v10, %v4511_v15  ;;  %v412_v24 = vcombine.low %v4490_v9, %v4508_v14  ;;  %v428_v25 = vcombine.low %v4502_v12, %v4514_v16  ;;  %v293_v31 = vcombine.high %v4493_v10, %v4511_v15 }
  0x18   : > { %6771 = vst [vmem:[#allocation4_spill] sm:$0xff] %v4521_v19  ;;  %6772 = vst [vmem:[#allocation5_spill] sm:$0xff] %v4527_v21  ;;  %v4538_v26 = vld [vmem:[%s4484_s22 + $0x80] sm:$0xff]  ;;  %v4541_v27 = vld [vmem:[%s4484_s22 + $0x90] sm:$0xff]  ;;  %v284_v29 = vrot.slane %v276_v17, %v4495_v11  ;;  %v4548_v30 = vrot.slane %v277_v18, %v4495_v11  ;;  %v413_v32 = vcombine.high %v4490_v9, %v4508_v14 }
  0x19   : > { %6773 = vst [vmem:[#allocation6_spill] sm:$0xff] %v4541_v27  ;;  %v4544_v28 = vld [vmem:[%s4484_s22 + $0x98] sm:$0xff]  ;;  %645 = vrot.lane.b32.xlu1 %v4493_v10, %s4424_s23  ;;  %v4557_v33 = vld [vmem:[%s4484_s22 + $0xa8] sm:$0xff]  ;;  %v4560_v34 = vld [vmem:[%s4484_s22 + $0xb0] sm:$0xff]  ;;  %v300_v35 = vrot.slane %v292_v22, %v4495_v11  ;;  %v308_v36 = vcombine.low %v4521_v19, %v4541_v27  ;;  %v420_v37 = vrot.slane %v412_v24, %v4495_v11 }
  0x1a   : > { %6774 = vst [vmem:[#allocation7_spill] sm:$0xff] %v4557_v33  ;;  %v436_v38 = vrot.slane %v428_v25, %v4495_v11  ;;  %v324_v39 = vcombine.low %v4527_v21, %v4557_v33  ;;  %v444_v40 = vcombine.low %v4524_v20, %v4544_v28  ;;  %v460_v41 = vcombine.low %v4538_v26, %v4560_v34 }
  0x1b   : > { %v429_v42 = vcombine.high %v4502_v12, %v4514_v16  ;;  %v316_v43 = vrot.slane %v308_v36, %v4495_v11  ;;  %v341_v44 = vcombine.high %v284_v29, %v300_v35  ;;  %v340_v46 = vcombine.low %v284_v29, %v300_v35 }
  0x1c   : > { %v477_v45 = vcombine.high %v420_v37, %v436_v38  ;;  %v332_v47 = vrot.slane %v324_v39, %v4495_v11  ;;  %v452_v48 = vrot.slane %v444_v40, %v4495_v11  ;;  %v468_v49 = vrot.slane %v460_v41, %v4495_v11 }
  0x1d   : > { %v476_v50 = vcombine.low %v420_v37, %v436_v38  ;;  %v355_v51 = vrot.slane %v341_v44, %v4531_v23  ;;  %v307_v53 = vrot.slane %v293_v31, %v4495_v11  ;;  %v309_v54 = vcombine.high %v4521_v19, %v4541_v27 }
  0x1e   : > { %v491_v52 = vrot.slane %v477_v45, %v4531_v23  ;;  %v373_v55 = vcombine.high %v316_v43, %v332_v47  ;;  %v509_v56 = vcombine.high %v452_v48, %v468_v49  ;;  %v4585_v57 = vrot.slane %v340_v46, %v4531_v23 }
  0x1f   : > { %v372_v58 = vcombine.low %v316_v43, %v332_v47  ;;  %v4588_v59 = vrot.slane %v476_v50, %v4531_v23  ;;  %v508_v60 = vcombine.low %v452_v48, %v468_v49  ;;  %v323_v61 = vrot.slane %v309_v54, %v4495_v11 }
  0x20   : > { %6775 = vst [vmem:[#allocation8_spill] sm:$0xff] %v4585_v57  ;;  %v325_v62 = vcombine.high %v4527_v21, %v4557_v33  ;;  %v387_v63 = vrot.slane %v373_v55, %v4531_v23  ;;  %v523_v0 = vrot.slane %v509_v56, %v4531_v23  ;;  %v427_v2 = vrot.slane %v413_v32, %v4495_v11 }
  0x21   : > { %6776 = vst [vmem:[#allocation9_spill] sm:$0xff] %v4588_v59  ;;  %v4596_v1 = vrot.slane %v372_v58, %v4531_v23  ;;  %v4600_v3 = vrot.slane %v508_v60, %v4531_v23  ;;  %v356_v5 = vcombine.low %v4548_v30, %v307_v53  ;;  %v443_v6 = vrot.slane %v429_v42, %v4495_v11 }
  0x22   : > { %v339_v4 = vrot.slane %v325_v62, %v4495_v11  ;;  %v407_v7 = vcombine.high %v355_v51, %v387_v63  ;;  %v543_v17 = vcombine.high %v491_v52, %v523_v0  ;;  %v445_v31 = vcombine.high %v4524_v20, %v4544_v28 }
  0x23   : > { %6777 = vst [vmem:[#allocation10_spill] sm:$0xff] %v4596_v1  ;;  %6778 = vst [vmem:[#allocation11_spill] sm:$0xff] %v4600_v3  ;;  %v405_v18 = vcombine.high %v4585_v57, %v4596_v1  ;;  %v541_v25 = vcombine.high %v4588_v59, %v4600_v3  ;;  %v461_v35 = vcombine.high %v4538_v26, %v4560_v34 }
  0x24   : > { %v388_v29 = vcombine.low %v323_v61, %v339_v4  ;;  %v4110_v32 = vpack.i.bf16 %v543_v17, %v407_v7  ;;  %v492_v36 = vcombine.low %v427_v2, %v443_v6  ;;  %v406_v37 = vcombine.low %v355_v51, %v387_v63 }
  0x25   : > { %v4100_v38 = vpack.i.bf16 %v541_v25, %v405_v18  ;;  %v364_v39 = vrot.slane %v356_v5, %v4531_v23  ;;  %v459_v40 = vrot.slane %v445_v31, %v4495_v11  ;;  %v542_v41 = vcombine.low %v491_v52, %v523_v0 }
  0x26   : > { %4111 = vrot.lane.b32.xlu1 %v4110_v32, %s4425_s24  ;;  %v396_v42 = vrot.slane %v388_v29, %v4531_v23  ;;  %v475_v43 = vrot.slane %v461_v35, %v4495_v11  ;;  %v357_v44 = vcombine.high %v4548_v30, %v307_v53  ;;  %v389_v45 = vcombine.high %v323_v61, %v339_v4  ;;  %v4694_v32 = vld [vmem:[%s4484_s22 + $0x28] sm:$0x3] }
  0x27   : > { %4101 = vrot.lane.b32.xlu0 %v4100_v38, %s4426_s25  ;;  %v500_v46 = vrot.slane %v492_v36, %v4531_v23  ;;  %v4105_v47 = vpack.i.bf16 %v542_v41, %v406_v37  ;;  %v493_v48 = vcombine.high %v427_v2, %v443_v6  ;;  %v1461_v7 = vrot.slane %v4544_v28, 1  ;;  %v4703_v37 = vld [vmem:[%s4484_s22 + $0x10] sm:$0x3]  ;;  %v4706_v38 = vld [vmem:[%s4484_s22 + $0x58] sm:$0x3] }
  0x28   : > { %v524_v49 = vcombine.low %v459_v40, %v475_v43  ;;  %v371_v50 = vrot.slane %v357_v44, %v4531_v23  ;;  %v403_v51 = vrot.slane %v389_v45, %v4531_v23  ;;  %v525_v52 = vcombine.high %v459_v40, %v475_v43  ;;  %v4720_v44 = vld [vmem:[%s4484_s22 + $0x40] sm:$0x3]  ;;  %v4723_v45 = vld [vmem:[%s4484_s22 + $0x88] sm:$0x3] }
  0x29   : > { %v507_v54 = vrot.slane %v493_v48, %v4531_v23  ;;  %v408_v55 = vcombine.low %v364_v39, %v396_v42  ;;  %v409_v53 = vcombine.high %v364_v39, %v396_v42  ;;  %v1460_v17 = vrot.slane %v4541_v27, 1 }
  0x2a   : > { %v532_v56 = vrot.slane %v524_v49, %v4531_v23  ;;  %v539_v30 = vrot.slane %v525_v52, %v4531_v23  ;;  %v410_v58 = vcombine.low %v371_v50, %v403_v51  ;;  %v411_v60 = vcombine.high %v371_v50, %v403_v51  ;;  %v4740_v52 = vld [vmem:[%s4484_s22 + $0x70] sm:$0x3] }
  0x2b   : > { %4106 = vrot.lane.b32.xlu0 %v4105_v47, %s4427_s26  ;;  %v4674_v18 = vsel %vm1429_vm0, %v1460_v17, %v1461_v7  ;;  %v1466_v25 = vrot.slane %v4560_v34, 1  ;;  %v1465_v29 = vrot.slane %v4557_v33, 1  ;;  %v1436_v35 = vrot.slane %v4502_v12, 1 }
  0x2c   : > { %v544_v61 = vcombine.low %v500_v46, %v532_v56  ;;  %v546_v62 = vcombine.low %v507_v54, %v539_v30  ;;  %v545_v63 = vcombine.high %v500_v46, %v532_v56  ;;  %v547_v0 = vcombine.high %v507_v54, %v539_v30  ;;  %v4743_v54 = vld [vmem:[%s4484_s22 + $0xb8] sm:$0x3] }
  0x2d   : > { %v4687_v31 = vsel %vm1429_vm0, %v1465_v29, %v1466_v25  ;;  %v1438_v36 = vrot.slane %v4694_v32, 1  ;;  %v1431_v39 = vrot.slane %v4490_v9, 1  ;;  %v1433_v41 = vrot.slane %v4703_v37, 1 }
  0x2e   : > { %v4115_v2 = vpack.i.bf16 %v544_v61, %v408_v55  ;;  %v4120_v4 = vpack.i.bf16 %v545_v63, %v409_v53  ;;  %v4125_v5 = vpack.i.bf16 %v546_v62, %v410_v58  ;;  %v4130_v6 = vpack.i.bf16 %v547_v0, %v411_v60  ;;  %v4759_v60 = vld [vmem:[%s4484_s22 + $0xa0] sm:$0x3] }
  0x2f   : > { %v4714_v40 = vsel %vm1429_vm0, %v1436_v35, %v1438_v36  ;;  %v1446_v42 = vrot.slane %v4514_v16, 1  ;;  %v1448_v43 = vrot.slane %v4706_v38, 1  ;;  %v1441_v46 = vrot.slane %v4508_v14, 1 }
  0x30   : > { %4116 = vrot.lane.b32.xlu1 %v4115_v2, %s4428_s27  ;;  %4121 = vrot.lane.b32.xlu0 %v4120_v4, %s4429_s28  ;;  %6779 = vst [vmem:[#allocation12_spill] sm:$0xff] %v4714_v40  ;;  %v1443_v47 = vrot.slane %v4720_v44, 1  ;;  %v4732_v48 = vsel %vm1429_vm0, %v1431_v39, %v1433_v41  ;;  %v1456_v50 = vrot.slane %v4538_v26, 1  ;;  %v1458_v51 = vrot.slane %v4723_v45, 1 }
  0x31   : > { %6780 = vst [vmem:[#allocation13_spill] sm:$0xff] %v4732_v48  ;;  %v4735_v49 = vsel %vm1429_vm0, %v1446_v42, %v1448_v43  ;;  %v1451_v30 = vrot.slane %v4524_v20, 1  ;;  %v1453_v53 = vrot.slane %v4740_v52, 1  ;;  %v1468_v58 = vrot.slane %v4743_v54, 1 }
  0x32   : > { %6781 = vst [vmem:[#allocation14_spill] sm:$0xff] %v4735_v49  ;;  %v4750_v55 = vsel %vm1429_vm0, %v1441_v46, %v1443_v47  ;;  %v4753_v56 = vsel %vm1429_vm0, %v1456_v50, %v1458_v51  ;;  %v1463_v63 = vrot.slane %v4759_v60, 1  ;;  %v1435_v2 = vrot.slane %v4493_v10, 1 }
  0x33   : > { %6782 = vst [vmem:[#allocation15_spill] sm:$0xff] %v4750_v55  ;;  %6783 = vst [vmem:[#allocation16_spill] sm:$0xff] %v4753_v56  ;;  %v4766_v61 = vsel %vm1429_vm0, %v1451_v30, %v1453_v53  ;;  %v4769_v62 = vsel %vm1429_vm0, %v1466_v25, %v1468_v58  ;;  %v1440_v29 = vrot.slane %v4505_v13, 1 }
  0x34   : > { %4126 = vrot.lane.b32.xlu1 %v4125_v5, %s4430_s29  ;;  %4131 = vrot.lane.b32.xlu0 %v4130_v6, %s4431_s30  ;;  %6784 = vst [vmem:[#allocation17_spill] sm:$0xff] %v4766_v61  ;;  %6785 = vst [vmem:[#allocation18_spill] sm:$0xff] %v4769_v62  ;;  %v4777_v0 = vsel %vm1429_vm0, %v1461_v7, %v1463_v63  ;;  %v4797_v4 = vsel %vm1429_vm0, %v1435_v2, %v1436_v35  ;;  %v1430_v5 = vrot.slane %v4487_v8, 1 }
  0x35   : > { %6786 = vst [vmem:[#allocation19_spill] sm:$0xff] %v4777_v0  ;;  %v1445_v6 = vrot.slane %v4511_v15, 1  ;;  %v1455_v35 = vrot.slane %v4527_v21, 1  ;;  %v4818_v41 = vsel %vm1429_vm0, %v1440_v29, %v1441_v46 }
  0x36   : > { %v4806_v17 = vsel %vm1429_vm0, %v1430_v5, %v1431_v39 }
  0x37   : > { %v4809_v25 = vsel %vm1429_vm0, %v1445_v6, %v1446_v42  ;;  %v4821_v39 = vsel %vm1429_vm0, %v1455_v35, %v1456_v50  ;;  %v1450_v42 = vrot.slane %v4521_v19, 1 }
  0x38   : > { %649 = vrot.lane.b32.xlu1 %v4505_v13, %s4424_s23  ;;  %647 = vrot.lane.b32.xlu0 %v4502_v12, %s4424_s23 }
  0x39   : > { %v4831_v51 = vsel %vm1429_vm0, %v1450_v42, %v1451_v30 }
  0x3c   : > { %653 = vrot.lane.b32.xlu1 %v4511_v15, %s4424_s23  ;;  %651 = vrot.lane.b32.xlu0 %v4508_v14, %s4424_s23 }
  0x40   : > { %657 = vrot.lane.b32.xlu1 %v4521_v19, %s4424_s23  ;;  %655 = vrot.lane.b32.xlu0 %v4514_v16, %s4424_s23 }
  0x44   : > { %661 = vrot.lane.b32.xlu1 %v4527_v21, %s4424_s23  ;;  %659 = vrot.lane.b32.xlu0 %v4524_v20, %s4424_s23 }
  0x48   : > { %665 = vrot.lane.b32.xlu1 %v4541_v27, %s4424_s23  ;;  %663 = vrot.lane.b32.xlu0 %v4538_v26, %s4424_s23 }
  0x4c   : > { %669 = vrot.lane.b32.xlu1 %v4557_v33, %s4424_s23  ;;  %667 = vrot.lane.b32.xlu0 %v4544_v28, %s4424_s23 }
  0x50   : > { %671 = vrot.lane.b32.xlu0 %v4560_v34, %s4424_s23  ;;  %1037 = vrot.lane.b32.xlu1 %v4502_v12, %s4432_s5 }
  0x54   : > { %1033 = vrot.lane.b32.xlu0 %v4490_v9, %s4432_s5  ;;  %1045 = vrot.lane.b32.xlu1 %v4514_v16, %s4432_s5 }
  0x58   : > { %1041 = vrot.lane.b32.xlu0 %v4508_v14, %s4432_s5  ;;  %1053 = vrot.lane.b32.xlu1 %v4538_v26, %s4432_s5 }
  0x5c   : > { %1049 = vrot.lane.b32.xlu0 %v4524_v20, %s4432_s5  ;;  %1061 = vrot.lane.b32.xlu1 %v4560_v34, %s4432_s5 }
  0x60   : > { %1057 = vrot.lane.b32.xlu0 %v4544_v28, %s4432_s5  ;;  %1035 = vrot.lane.b32.xlu1 %v4493_v10, %s4432_s5 }
  0x64   : > { %1031 = vrot.lane.b32.xlu0 %v4487_v8, %s4432_s5  ;;  %1043 = vrot.lane.b32.xlu1 %v4511_v15, %s4432_s5 }
  0x68   : > { %1039 = vrot.lane.b32.xlu0 %v4505_v13, %s4432_s5  ;;  %1051 = vrot.lane.b32.xlu1 %v4527_v21, %s4432_s5 }
  0x6c   : > { %1047 = vrot.lane.b32.xlu0 %v4521_v19, %s4432_s5  ;;  %1059 = vrot.lane.b32.xlu1 %v4557_v33, %s4432_s5 }
  0x70   : > { %1055 = vrot.lane.b32.xlu0 %v4541_v27, %s4432_s5  ;;  %1834 = vrot.lane.b32.xlu1 %v4714_v40, %s4424_s23 }
  0x74   : > { %1830 = vrot.lane.b32.xlu0 %v4732_v48, %s4424_s23  ;;  %1842 = vrot.lane.b32.xlu1 %v4735_v49, %s4424_s23 }
  0x78   : > { %1838 = vrot.lane.b32.xlu0 %v4750_v55, %s4424_s23  ;;  %1850 = vrot.lane.b32.xlu1 %v4753_v56, %s4424_s23 }
  0x7c   : > { %1846 = vrot.lane.b32.xlu0 %v4766_v61, %s4424_s23  ;;  %1858 = vrot.lane.b32.xlu1 %v4769_v62, %s4424_s23 }
  0x80   : > { %1854 = vrot.lane.b32.xlu0 %v4777_v0, %s4424_s23  ;;  %2224 = vrot.lane.b32.xlu1 %v4714_v40, %s4432_s5 }
  0x84   : > { %2220 = vrot.lane.b32.xlu0 %v4732_v48, %s4432_s5  ;;  %2232 = vrot.lane.b32.xlu1 %v4735_v49, %s4432_s5 }
  0x87   : > { %v642_v7 = vpop.permute.xlu1 %641  ;;  %v644_v36 = vpop.permute.xlu0 %643 }
  0x88   : > { %2228 = vrot.lane.b32.xlu0 %v4750_v55, %s4432_s5  ;;  %2240 = vrot.lane.b32.xlu1 %v4753_v56, %s4432_s5 }
  0x8b   : > { %v646_v43 = vpop.permute.xlu1 %645 }
  0x8c   : > { %2236 = vrot.lane.b32.xlu0 %v4766_v61, %s4432_s5  ;;  %2248 = vrot.lane.b32.xlu1 %v4769_v62, %s4432_s5 }
  0x90   : > { %2244 = vrot.lane.b32.xlu0 %v4777_v0, %s4432_s5  ;;  %1832 = vrot.lane.b32.xlu1 %v4797_v4, %s4424_s23 }
  0x94   : > { %1828 = vrot.lane.b32.xlu0 %v4806_v17, %s4424_s23  ;;  %1840 = vrot.lane.b32.xlu1 %v4809_v25, %s4424_s23 }
  0x98   : > { %1836 = vrot.lane.b32.xlu0 %v4818_v41, %s4424_s23  ;;  %1848 = vrot.lane.b32.xlu1 %v4821_v39, %s4424_s23  ;;  %v4833_v53 = vpop.permute.xlu1 %4111 }
  0x99   : > { %v4828_v47 = vpop.permute.xlu0 %4101  ;;  %6788 = vst [vmem:[#allocation21_spill] sm:$0xff] %v4833_v53 }
  0x9a   : > { %6787 = vst [vmem:[#allocation20_spill] sm:$0xff] %v4828_v47 }
  0x9c   : > { %1844 = vrot.lane.b32.xlu0 %v4831_v51, %s4424_s23 }
  0x9d   : > { %v4837_v46 = vpop.permute.xlu0 %4106 }
  0x9e   : > { %6789 = vst [vmem:[#allocation22_spill] sm:$0xff] %v4837_v46 }
  0xa2   : > { %v4839_v50 = vpop.permute.xlu1 %4116  ;;  %v4841_v58 = vpop.permute.xlu0 %4121 }
  0xa3   : > { %6790 = vst [vmem:[#allocation23_spill] sm:$0xff] %v4839_v50  ;;  %6791 = vst [vmem:[#allocation24_spill] sm:$0xff] %v4841_v58 }
  0xa6   : > { %v4843_v63 = vpop.permute.xlu1 %4126  ;;  %v4845_v2 = vpop.permute.xlu0 %4131 }
  0xa7   : > { %6792 = vst [vmem:[#allocation25_spill] sm:$0xff] %v4843_v63  ;;  %6793 = vst [vmem:[#allocation26_spill] sm:$0xff] %v4845_v2 }
  0xaa   : > { %v650_v5 = vpop.permute.xlu1 %649  ;;  %v648_v6 = vpop.permute.xlu0 %647 }
  0xab   : > { %v689_v59 = vcombine.low %v642_v7, %v650_v5  ;;  %v690_v57 = vcombine.high %v642_v7, %v650_v5 }
  0xad   : > { %v697_v2 = vrot.slane %v689_v59, %v4495_v11  ;;  %v4850_v40 = vrot.slane %v690_v57, %v4495_v11 }
  0xae   : > { %v654_v29 = vpop.permute.xlu1 %653  ;;  %v652_v30 = vpop.permute.xlu0 %651 }
  0xaf   : > { %v705_v3 = vcombine.low %v646_v43, %v654_v29  ;;  %v706_v50 = vcombine.high %v646_v43, %v654_v29  ;;  %v825_v47 = vcombine.low %v644_v36, %v652_v30  ;;  %v826_v61 = vcombine.high %v644_v36, %v652_v30 }
  0xb1   : > { %v713_v58 = vrot.slane %v705_v3, %v4495_v11  ;;  %v4853_v49 = vrot.slane %v706_v50, %v4495_v11  ;;  %v833_v36 = vrot.slane %v825_v47, %v4495_v11 }
  0xb2   : > { %v658_v35 = vpop.permute.xlu1 %657  ;;  %v656_v42 = vpop.permute.xlu0 %655 }
  0xb3   : > { %v841_v46 = vcombine.low %v648_v6, %v656_v42  ;;  %v842_v62 = vcombine.high %v648_v6, %v656_v42  ;;  %v753_v7 = vcombine.low %v697_v2, %v713_v58  ;;  %v840_v6 = vrot.slane %v826_v61, %v4495_v11 }
  0xb5   : > { %v849_v3 = vrot.slane %v841_v46, %v4495_v11  ;;  %v856_v50 = vrot.slane %v842_v62, %v4495_v11 }
  0xb6   : > { %v662_v24 = vpop.permute.xlu1 %661  ;;  %v660_v22 = vpop.permute.xlu0 %659 }
  0xb7   : > { %v889_v47 = vcombine.low %v833_v36, %v849_v3  ;;  %v890_v33 = vcombine.high %v833_v36, %v849_v3 }
  0xb9   : > { %v4888_v27 = vrot.slane %v889_v47, %v4531_v23 }
  0xba   : > { %v666_v53 = vpop.permute.xlu1 %665  ;;  %v664_v1 = vpop.permute.xlu0 %663 }
  0xbb   : > { %v721_v63 = vcombine.low %v658_v35, %v666_v53  ;;  %v722_v43 = vcombine.high %v658_v35, %v666_v53  ;;  %v754_v53 = vcombine.high %v697_v2, %v713_v58  ;;  %6796 = vst [vmem:[#allocation29_spill] sm:$0xff] %v4888_v27 }
  0xbd   : > { %v729_v5 = vrot.slane %v721_v63, %v4495_v11  ;;  %v736_v61 = vrot.slane %v722_v43, %v4495_v11 }
  0xbe   : > { %v670_v0 = vpop.permute.xlu1 %669  ;;  %v668_v56 = vpop.permute.xlu0 %667 }
  0xbf   : > { %v737_v48 = vcombine.low %v662_v24, %v670_v0  ;;  %v738_v55 = vcombine.high %v662_v24, %v670_v0  ;;  %v857_v29 = vcombine.low %v660_v22, %v668_v56  ;;  %v858_v24 = vcombine.high %v660_v22, %v668_v56 }
  0xc1   : > { %v745_v59 = vrot.slane %v737_v48, %v4495_v11  ;;  %v752_v30 = vrot.slane %v738_v55, %v4495_v11  ;;  %v4865_v48 = vrot.slane %v753_v7, %v4531_v23  ;;  %v865_v56 = vrot.slane %v857_v29, %v4495_v11 }
  0xc2   : > { %v672_v0 = vpop.permute.xlu0 %671  ;;  %v4860_v57 = vpop.permute.xlu1 %1037  ;;  %v872_v62 = vrot.slane %v858_v24, %v4495_v11  ;;  %v905_v7 = vcombine.low %v840_v6, %v856_v50 }
  0xc3   : > { %v785_v42 = vcombine.low %v729_v5, %v745_v59  ;;  %v786_v46 = vcombine.high %v729_v5, %v745_v59  ;;  %v873_v35 = vcombine.low %v664_v1, %v672_v0  ;;  %v874_v63 = vcombine.high %v664_v1, %v672_v0  ;;  %6794 = vst [vmem:[#allocation27_spill] sm:$0xff] %v4865_v48 }
  0xc4   : > { %v801_v5 = vcombine.low %v736_v61, %v752_v30  ;;  %v769_v59 = vcombine.low %v4850_v40, %v4853_v49  ;;  %v906_v0 = vcombine.high %v840_v6, %v856_v50  ;;  %v802_v6 = vcombine.high %v736_v61, %v752_v30 }
  0xc5   : > { %v4869_v22 = vrot.slane %v785_v42, %v4531_v23  ;;  %v881_v55 = vrot.slane %v873_v35, %v4495_v11  ;;  %v888_v58 = vrot.slane %v874_v63, %v4495_v11  ;;  %v800_v3 = vrot.slane %v786_v46, %v4531_v23 }
  0xc6   : > { %v4875_v2 = vpop.permute.xlu0 %1033  ;;  %v4877_v1 = vpop.permute.xlu1 %1045  ;;  %v768_v35 = vrot.slane %v754_v53, %v4531_v23  ;;  %v904_v63 = vrot.slane %v890_v33, %v4531_v23  ;;  %v809_v53 = vrot.slane %v801_v5, %v4531_v23  ;;  %v913_v33 = vrot.slane %v905_v7, %v4531_v23 }
  0xc7   : > { %6795 = vst [vmem:[#allocation28_spill] sm:$0xff] %v4869_v22  ;;  %v921_v36 = vcombine.low %v865_v56, %v881_v55  ;;  %v922_v29 = vcombine.high %v865_v56, %v881_v55  ;;  %v937_v24 = vcombine.low %v872_v62, %v888_v58  ;;  %v938_v42 = vcombine.high %v872_v62, %v888_v58 }
  0xc8   : > { %v819_v50 = vcombine.low %v768_v35, %v800_v3  ;;  %v818_v47 = vcombine.high %v4865_v48, %v4869_v22  ;;  %v777_v30 = vrot.slane %v769_v59, %v4531_v23  ;;  %v816_v48 = vrot.slane %v802_v6, %v4531_v23 }
  0xc9   : > { %v936_v21 = vrot.slane %v922_v29, %v4531_v23  ;;  %v4891_v46 = vrot.slane %v921_v36, %v4531_v23  ;;  %v945_v43 = vrot.slane %v937_v24, %v4531_v23  ;;  %v770_v36 = vcombine.high %v4850_v40, %v4853_v49 }
  0xca   : > { %v4894_v15 = vpop.permute.xlu0 %1041  ;;  %v4896_v56 = vpop.permute.xlu1 %1053  ;;  %v952_v61 = vrot.slane %v938_v42, %v4531_v23  ;;  %v920_v10 = vrot.slane %v906_v0, %v4531_v23  ;;  %v821_v40 = vcombine.low %v777_v30, %v809_v53  ;;  %v820_v49 = vcombine.high %v768_v35, %v800_v3 }
  0xcb   : > { %6797 = vst [vmem:[#allocation30_spill] sm:$0xff] %v4891_v46  ;;  %v955_v62 = vcombine.low %v904_v63, %v936_v21  ;;  %v954_v55 = vcombine.high %v4888_v27, %v4891_v46  ;;  %v957_v7 = vcombine.low %v913_v33, %v945_v43  ;;  %v956_v24 = vcombine.high %v904_v63, %v936_v21 }
  0xcc   : > { %v784_v59 = vrot.slane %v770_v36, %v4531_v23  ;;  %v959_v42 = vcombine.low %v920_v10, %v952_v61  ;;  %v1231_v21 = vcombine.low %v4860_v57, %v4877_v1  ;;  %v1215_v63 = vcombine.low %v4875_v2, %v4894_v15 }
  0xcd   : > { %v4140_v5 = vpack.i.bf16 %v955_v62, %v819_v50  ;;  %v4135_v29 = vpack.i.bf16 %v954_v55, %v818_v47  ;;  %v4150_v50 = vpack.i.bf16 %v957_v7, %v821_v40  ;;  %v4145_v62 = vpack.i.bf16 %v956_v24, %v820_v49 }
  0xce   : > { %v4910_v19 = vpop.permute.xlu0 %1049  ;;  %v4912_v22 = vpop.permute.xlu1 %1061  ;;  %v958_v6 = vcombine.high %v913_v33, %v945_v43  ;;  %v823_v3 = vcombine.low %v784_v59, %v816_v48  ;;  %v822_v36 = vcombine.high %v777_v30, %v809_v53  ;;  %v4934_v43 = vrot.slane %v1231_v21, %v4495_v11 }
  0xcf   : > { %4141 = vrot.lane.b32.xlu0 %v4140_v5, %s4427_s26  ;;  %4136 = vrot.lane.b32.xlu1 %v4135_v29, %s4426_s25  ;;  %v1263_v0 = vcombine.low %v4896_v56, %v4912_v22  ;;  %v960_v29 = vcombine.high %v920_v10, %v952_v61  ;;  %v4937_v7 = vrot.slane %v1215_v63, %v4495_v11 }
  0xd0   : > { %v4160_v5 = vpack.i.bf16 %v959_v42, %v823_v3  ;;  %v4155_v33 = vpack.i.bf16 %v958_v6, %v822_v36  ;;  %v824_v10 = vcombine.high %v784_v59, %v816_v48 }
  0xd1   : > { %v4940_v24 = vrot.slane %v1263_v0, %v4495_v11  ;;  %v1279_v30 = vcombine.low %v4937_v7, %v4934_v43 }
  0xd2   : > { %v4925_v47 = vpop.permute.xlu0 %1057  ;;  %v4927_v55 = vpop.permute.xlu1 %1035  ;;  %v4165_v53 = vpack.i.bf16 %v960_v29, %v824_v10 }
  0xd3   : > { %v1247_v35 = vcombine.low %v4910_v19, %v4925_v47  ;;  %4151 = vrot.lane.b32.xlu0 %v4150_v50, %s4428_s27  ;;  %4146 = vrot.lane.b32.xlu1 %v4145_v62, %s4425_s24  ;;  %v4963_v63 = vrot.slane %v1279_v30, %v4531_v23 }
  0xd5   : > { %v4943_v40 = vrot.slane %v1247_v35, %v4495_v11  ;;  %6798 = vst [vmem:[#allocation31_spill] sm:$0xff] %v4963_v63  ;;  %v2615_v63 = vrot.slane %v4502_v12, 2 }
  0xd6   : > { %v4945_v49 = vpop.permute.xlu0 %1031  ;;  %v4947_v50 = vpop.permute.xlu1 %1043 }
  0xd7   : > { %4161 = vrot.lane.b32.xlu0 %v4160_v5, %s4430_s29  ;;  %4156 = vrot.lane.b32.xlu1 %v4155_v33, %s4429_s28  ;;  %v1311_v61 = vcombine.low %v4943_v40, %v4940_v24  ;;  %v1095_v6 = vcombine.low %v4927_v55, %v4947_v50 }
  0xd9   : > { %v4966_v48 = vrot.slane %v1311_v61, %v4531_v23  ;;  %v4995_v33 = vrot.slane %v1095_v6, %v4495_v11  ;;  %v2610_v6 = vrot.slane %v4490_v9, 2  ;;  %v2620_v9 = vrot.slane %v4508_v14, 2 }
  0xda   : > { %v4955_v42 = vpop.permute.xlu0 %1039  ;;  %v4957_v21 = vpop.permute.xlu1 %1051  ;;  %v2630_v14 = vrot.slane %v4524_v20, 2 }
  0xdb   : > { %1852 = vrot.lane.b32.xlu0 %v4674_v18, %s4424_s23  ;;  %4166 = vrot.lane.b32.xlu1 %v4165_v53, %s4431_s30  ;;  %6799 = vst [vmem:[#allocation32_spill] sm:$0xff] %v4966_v48  ;;  %v1079_v0 = vcombine.low %v4945_v49, %v4955_v42  ;;  %6803 = vst [vmem:[#allocation36_spill] sm:$0xff] %v4995_v33  ;;  %v2617_v48 = vrot.slane %v4694_v32, 2 }
  0xdd   : > { %v4998_v10 = vrot.slane %v1079_v0, %v4495_v11  ;;  %v2612_v0 = vrot.slane %v4703_v37, 2  ;;  %v2622_v37 = vrot.slane %v4720_v44, 2  ;;  %v5054_v32 = vsel %vm2608_vm1, %v2615_v63, %v2617_v48 }
  0xde   : > { %v4968_v59 = vpop.permute.xlu0 %1047  ;;  %v4970_v62 = vpop.permute.xlu1 %1059  ;;  %v2632_v44 = vrot.slane %v4740_v52, 2 }
  0xdf   : > { %6800 = vst [vmem:[#allocation33_spill] sm:$0xff] %v4968_v59  ;;  %2218 = vrot.lane.b32.xlu0 %v4806_v17, %s4432_s5  ;;  %1856 = vrot.lane.b32.xlu1 %v4687_v31, %s4424_s23  ;;  %v1127_v3 = vcombine.low %v4957_v21, %v4970_v62  ;;  %6804 = vst [vmem:[#allocation37_spill] sm:$0xff] %v4998_v10  ;;  %v5031_v27 = vsel %vm2608_vm1, %v2610_v6, %v2612_v0  ;;  %v2625_v0 = vrot.slane %v4514_v16, 2 }
  0xe0   : > { %v5050_v12 = vsel %vm2608_vm1, %v2620_v9, %v2622_v37  ;;  %v2642_v37 = vrot.slane %v4759_v60, 2  ;;  %v5080_v52 = vsel %vm2608_vm1, %v2630_v14, %v2632_v44 }
  0xe1   : > { %v5001_v53 = vrot.slane %v1127_v3, %v4495_v11  ;;  %v1143_v3 = vcombine.low %v4998_v10, %v4995_v33 }
  0xe2   : > { %v4982_v35 = vpop.permute.xlu0 %1055  ;;  %v4984_v36 = vpop.permute.xlu1 %1834 }
  0xe3   : > { %6801 = vst [vmem:[#allocation34_spill] sm:$0xff] %v4982_v35  ;;  %6802 = vst [vmem:[#allocation35_spill] sm:$0xff] %v4984_v36  ;;  %v1111_v29 = vcombine.low %v4968_v59, %v4982_v35  ;;  %2226 = vrot.lane.b32.xlu0 %v4818_v41, %s4432_s5  ;;  %2222 = vrot.lane.b32.xlu1 %v4797_v4, %s4432_s5  ;;  %v2640_v35 = vrot.slane %v4544_v28, 2  ;;  %v2635_v59 = vrot.slane %v4538_v26, 2 }
  0xe4   : > { %6805 = vst [vmem:[#allocation38_spill] sm:$0xff] %v5001_v53 }
  0xe5   : > { %v5004_v30 = vrot.slane %v1111_v29, %v4495_v11 }
  0xe6   : > { %v5006_v61 = vpop.permute.xlu0 %1830  ;;  %v5008_v5 = vpop.permute.xlu1 %1842 }
  0xe7   : > { %6806 = vst [vmem:[#allocation39_spill] sm:$0xff] %v5004_v30  ;;  %6807 = vst [vmem:[#allocation40_spill] sm:$0xff] %v5006_v61  ;;  %2234 = vrot.lane.b32.xlu0 %v4831_v51, %s4432_s5  ;;  %2230 = vrot.lane.b32.xlu1 %v4809_v25, %s4432_s5  ;;  %v1175_v29 = vcombine.low %v5004_v30, %v5001_v53  ;;  %v5036_v30 = vrot.slane %v1143_v3, %v4531_v23  ;;  %v2627_v3 = vrot.slane %v4706_v38, 2 }
  0xe8   : > { %6808 = vst [vmem:[#allocation41_spill] sm:$0xff] %v5008_v5  ;;  %v2028_v20 = vcombine.low %v4984_v36, %v5008_v5  ;;  %v2637_v36 = vrot.slane %v4723_v45, 2 }
  0xe9   : > { %6811 = vst [vmem:[#allocation44_spill] sm:$0xff] %v5036_v30  ;;  %v5039_v53 = vrot.slane %v1175_v29, %v4531_v23  ;;  %v5083_v60 = vsel %vm2608_vm1, %v2625_v0, %v2627_v3 }
  0xea   : > { %v5020_v58 = vpop.permute.xlu0 %1838  ;;  %v5022_v46 = vpop.permute.xlu1 %1850  ;;  %v5109_v3 = vsel %vm2608_vm1, %v2635_v59, %v2637_v36 }
  0xeb   : > { %6809 = vst [vmem:[#allocation42_spill] sm:$0xff] %v5020_v58  ;;  %6810 = vst [vmem:[#allocation43_spill] sm:$0xff] %v5022_v46  ;;  %2242 = vrot.lane.b32.xlu0 %v4674_v18, %s4432_s5  ;;  %2238 = vrot.lane.b32.xlu1 %v4821_v39, %s4432_s5  ;;  %v2012_v16 = vcombine.low %v5006_v61, %v5020_v58  ;;  %v5090_v61 = vsel %vm2608_vm1, %v2640_v35, %v2642_v37  ;;  %v2609_v37 = vrot.slane %v4487_v8, 2 }
  0xec   : > { %6812 = vst [vmem:[#allocation45_spill] sm:$0xff] %v5039_v53 }
  0xed   : > { %v5100_v44 = vrot.slane %v2012_v16, %v4495_v11  ;;  %v2619_v16 = vrot.slane %v4505_v13, 2 }
  0xee   : > { %v5041_v10 = vpop.permute.xlu0 %1846  ;;  %v5043_v33 = vpop.permute.xlu1 %1858 }
  0xef   : > { %6813 = vst [vmem:[#allocation46_spill] sm:$0xff] %v5041_v10  ;;  %6814 = vst [vmem:[#allocation47_spill] sm:$0xff] %v5043_v33  ;;  %3009 = vrot.lane.b32.xlu0 %v5031_v27, %s4424_s23  ;;  %2246 = vrot.lane.b32.xlu1 %v4687_v31, %s4432_s5  ;;  %v2060_v38 = vcombine.low %v5022_v46, %v5043_v33  ;;  %v5093_v46 = vrot.slane %v2028_v20, %v4495_v11  ;;  %v2645_v20 = vrot.slane %v4560_v34, 2 }
  0xf0   : > { %6819 = vst [vmem:[#allocation52_spill] sm:$0xff] %v5100_v44  ;;  %v5127_v34 = vsel %vm2608_vm1, %v2609_v37, %v2610_v6  ;;  %v5149_v13 = vsel %vm2608_vm1, %v2619_v16, %v2620_v9  ;;  %v6829_v37 = vld [vmem:[#allocation4_spill] sm:$0xff] }
  0xf1   : > { %6818 = vst [vmem:[#allocation51_spill] sm:$0xff] %v5093_v46  ;;  %v5103_v26 = vrot.slane %v2060_v38, %v4495_v11  ;;  %v2076_v36 = vcombine.low %v5100_v44, %v5093_v46  ;;  %v6824_v38 = vld [vmem:[#allocation2_spill] sm:$0xff] }
  0xf2   : > { %v5059_v29 = vpop.permute.xlu0 %1854  ;;  %v5067_v48 = vpop.permute.xlu1 %2224 }
  0xf3   : > { %6815 = vst [vmem:[#allocation48_spill] sm:$0xff] %v5059_v29  ;;  %6816 = vst [vmem:[#allocation49_spill] sm:$0xff] %v5067_v48  ;;  %3017 = vrot.lane.b32.xlu0 %v5050_v12, %s4424_s23  ;;  %3013 = vrot.lane.b32.xlu1 %v5054_v32, %s4424_s23  ;;  %v2044_v28 = vcombine.low %v5041_v10, %v5059_v29  ;;  %v2647_v10 = vrot.slane %v4743_v54, 2  ;;  %v5139_v53 = vrot.slane %v2076_v36, %v4531_v23 }
  0xf4   : > { %6820 = vst [vmem:[#allocation53_spill] sm:$0xff] %v5103_v26 }
  0xf5   : > { %v5106_v45 = vrot.slane %v2044_v28, %v4495_v11  ;;  %v5130_v54 = vsel %vm2608_vm1, %v2645_v20, %v2647_v10  ;;  %v2614_v28 = vrot.slane %v6824_v38, 2  ;;  %6827 = vst [vmem:[#allocation58_spill] sm:$0xff] %v5139_v53  ;;  %v2629_v38 = vrot.slane %v6829_v37, 2 }
  0xf6   : > { %v5087_v5 = vpop.permute.xlu0 %2220  ;;  %v5114_v29 = vpop.permute.xlu1 %2232 }
  0xf7   : > { %6817 = vst [vmem:[#allocation50_spill] sm:$0xff] %v5087_v5  ;;  %3025 = vrot.lane.b32.xlu0 %v5080_v52, %s4424_s23  ;;  %3021 = vrot.lane.b32.xlu1 %v5083_v60, %s4424_s23  ;;  %6821 = vst [vmem:[#allocation54_spill] sm:$0xff] %v5106_v45  ;;  %v2108_v8 = vcombine.low %v5106_v45, %v5103_v26  ;;  %v5152_v6 = vsel %vm2608_vm1, %v2614_v28, %v2615_v63  ;;  %v6830_v45 = vld [vmem:[#allocation3_spill] sm:$0xff]  ;;  %v6831_v63 = vld [vmem:[#allocation6_spill] sm:$0xff] }
  0xf8   : > { %6822 = vst [vmem:[#allocation55_spill] sm:$0xff] %v5114_v29  ;;  %v2624_v36 = vrot.slane %v6830_v45, 2  ;;  %v5163_v26 = vsel %vm2608_vm1, %v2629_v38, %v2630_v14  ;;  %v2639_v16 = vrot.slane %v6831_v63, 2  ;;  %v6832_v28 = vld [vmem:[#allocation5_spill] sm:$0xff]  ;;  %v2418_v46 = vcombine.low %v5067_v48, %v5114_v29  ;;  %v6847_v29 = vld [vmem:[#allocation16_spill] sm:$0xff] }
  0xf9   : > { %v5146_v10 = vrot.slane %v2108_v8, %v4531_v23  ;;  %v2634_v37 = vrot.slane %v6832_v28, 2  ;;  %v6836_v28 = vld [vmem:[#allocation7_spill] sm:$0xff] }
  0xfa   : > { %v5116_v33 = vpop.permute.xlu0 %2228  ;;  %v5134_v58 = vpop.permute.xlu1 %2240  ;;  %v5166_v9 = vsel %vm2608_vm1, %v2624_v36, %v2625_v0  ;;  %v5187_v36 = vsel %vm2608_vm1, %v2639_v16, %v2640_v35  ;;  %v2644_v8 = vrot.slane %v6836_v28, 2  ;;  %v5194_v48 = vrot.slane %v2418_v46, %v4495_v11 }
  0xfb   : > { %6823 = vst [vmem:[#allocation56_spill] sm:$0xff] %v5116_v33  ;;  %3033 = vrot.lane.b32.xlu0 %v5090_v61, %s4424_s23  ;;  %3029 = vrot.lane.b32.xlu1 %v5109_v3, %s4424_s23  ;;  %6825 = vst [vmem:[#allocation2_spill] sm:$0xff] %v5134_v58  ;;  %v2402_v14 = vcombine.low %v5087_v5, %v5116_v33  ;;  %v5190_v63 = vsel %vm2608_vm1, %v2634_v37, %v2635_v59  ;;  %v6846_v33 = vld [vmem:[#allocation18_spill] sm:$0xff] }
  0xfc   : > { %6828 = vst [vmem:[#allocation59_spill] sm:$0xff] %v5146_v10  ;;  %6835 = vst [vmem:[#allocation6_spill] sm:$0xff] %v5190_v63  ;;  %v5210_v16 = vsel %vm2608_vm1, %v2644_v8, %v2645_v20  ;;  %v1670_v53 = vcombine.low %v6847_v29, %v6846_v33  ;;  %v1487_v8 = vcombine.high %v4806_v17, %v4818_v41 }
  0xfd   : > { %6839 = vst [vmem:[#allocation60_spill] sm:$0xff] %v5210_v16 }
  0xfe   : > { %v5136_v30 = vpop.permute.xlu0 %2236  ;;  %v5170_v45 = vpop.permute.xlu1 %2248 }
  0xff   : > { %6826 = vst [vmem:[#allocation57_spill] sm:$0xff] %v5136_v30  ;;  %3007 = vrot.lane.b32.xlu0 %v5127_v34, %s4424_s23  ;;  %3037 = vrot.lane.b32.xlu1 %v5130_v54, %s4424_s23  ;;  %6833 = vst [vmem:[#allocation4_spill] sm:$0xff] %v5170_v45  ;;  %v2450_v0 = vcombine.low %v5134_v58, %v5170_v45  ;;  %v5201_v58 = vrot.slane %v2402_v14, %v4495_v11  ;;  %v6840_v14 = vld [vmem:[#allocation14_spill] sm:$0xff]  ;;  %v6845_v45 = vld [vmem:[#allocation13_spill] sm:$0xff] }
 0x101   : > { %v5204_v35 = vrot.slane %v2450_v0, %v4495_v11  ;;  %v2466_v46 = vcombine.low %v5201_v58, %v5194_v48  ;;  %v6841_v0 = vld [vmem:[#allocation12_spill] sm:$0xff] }
 0x102   : > { %v5172_v44 = vpop.permute.xlu0 %2244  ;;  %v1638_v28 = vcombine.low %v6841_v0, %v6840_v14 }
 0x103   : > { %3015 = vrot.lane.b32.xlu0 %v5149_v13, %s4424_s23  ;;  %3011 = vrot.lane.b32.xlu1 %v5152_v6, %s4424_s23  ;;  %6834 = vst [vmem:[#allocation3_spill] sm:$0xff] %v5172_v44  ;;  %v2434_v38 = vcombine.low %v5136_v30, %v5172_v44  ;;  %6837 = vst [vmem:[#allocation5_spill] sm:$0xff] %v5204_v35  ;;  %v1639_v30 = vcombine.high %v6841_v0, %v6840_v14  ;;  %v6844_v44 = vld [vmem:[#allocation15_spill] sm:$0xff] }
 0x104   : > { %v1622_v5 = vcombine.low %v6845_v45, %v6844_v44  ;;  %v1646_v10 = vrot.slane %v1638_v28, %v4495_v11  ;;  %v1671_v14 = vcombine.high %v6847_v29, %v6846_v33  ;;  %v1486_v0 = vcombine.low %v4806_v17, %v4818_v41 }
 0x105   : > { %v5207_v59 = vrot.slane %v2434_v38, %v4495_v11  ;;  %v5223_v38 = vrot.slane %v2466_v46, %v4531_v23  ;;  %v1623_v46 = vcombine.high %v6845_v45, %v6844_v44  ;;  %v1502_v45 = vcombine.low %v4797_v4, %v4809_v25 }
 0x106   : > { %v1503_v28 = vcombine.high %v4797_v4, %v4809_v25  ;;  %v1534_v33 = vcombine.low %v4821_v39, %v4687_v31  ;;  %v5266_v29 = vrot.slane %v1639_v30, %v4495_v11  ;;  %v1519_v17 = vcombine.high %v4831_v51, %v4674_v18 }
 0x107   : > { %3023 = vrot.lane.b32.xlu0 %v5163_v26, %s4424_s23  ;;  %3019 = vrot.lane.b32.xlu1 %v5166_v9, %s4424_s23  ;;  %6838 = vst [vmem:[#allocation7_spill] sm:$0xff] %v5207_v59  ;;  %v2498_v37 = vcombine.low %v5207_v59, %v5204_v35  ;;  %6842 = vst [vmem:[#allocation14_spill] sm:$0xff] %v5223_v38  ;;  %v6848_v59 = vld [vmem:[#allocation19_spill] sm:$0xff]  ;;  %v1518_v38 = vcombine.low %v4831_v51, %v4674_v18 }
 0x108   : > { %v1535_v25 = vcombine.high %v4821_v39, %v4687_v31  ;;  %v5283_v41 = vrot.slane %v1671_v14, %v4495_v11  ;;  %v1494_v30 = vrot.slane %v1486_v0, %v4495_v11  ;;  %v5291_v18 = vrot.slane %v1503_v28, %v4495_v11 }
 0x109   : > { %v5230_v20 = vrot.slane %v2498_v37, %v4531_v23  ;;  %v6849_v37 = vld [vmem:[#allocation17_spill] sm:$0xff]  ;;  %v5294_v31 = vrot.slane %v1487_v8, %v4495_v11  ;;  %v1526_v39 = vrot.slane %v1518_v38, %v4495_v11  ;;  %v1542_v51 = vrot.slane %v1534_v33, %v4495_v11  ;;  %v6861_v8 = vld [vmem:[#allocation31_spill] sm:$0xff] }
 0x10a   : > { %v1654_v35 = vcombine.low %v6849_v37, %v6848_v59  ;;  %v1655_v44 = vcombine.high %v6849_v37, %v6848_v59  ;;  %v1630_v59 = vrot.slane %v1622_v5, %v4495_v11  ;;  %v5270_v37 = vrot.slane %v1623_v46, %v4495_v11 }
 0x10b   : > { %3031 = vrot.lane.b32.xlu0 %v5187_v36, %s4424_s23  ;;  %3027 = vrot.lane.b32.xlu1 %v5190_v63, %s4424_s23  ;;  %6843 = vst [vmem:[#allocation12_spill] sm:$0xff] %v5230_v20  ;;  %v1678_v20 = vrot.slane %v1670_v53, %v4495_v11  ;;  %v1510_v53 = vrot.slane %v1502_v45, %v4495_v11 }
 0x10c   : > { %v1662_v4 = vrot.slane %v1654_v35, %v4495_v11  ;;  %v5286_v5 = vrot.slane %v1655_v44, %v4495_v11  ;;  %v1686_v35 = vcombine.low %v1630_v59, %v1646_v10  ;;  %v1687_v46 = vcombine.high %v1630_v59, %v1646_v10 }
 0x10d   : > { %v5303_v0 = vrot.slane %v1519_v17, %v4495_v11  ;;  %v5306_v28 = vrot.slane %v1535_v25, %v4495_v11  ;;  %v1550_v33 = vcombine.low %v1494_v30, %v1510_v53  ;;  %v1551_v59 = vcombine.high %v1494_v30, %v1510_v53 }
 0x10e   : > { %v1718_v45 = vcombine.low %v1662_v4, %v1678_v20  ;;  %v1719_v10 = vcombine.high %v1662_v4, %v1678_v20  ;;  %v1582_v44 = vcombine.low %v1526_v39, %v1542_v51  ;;  %v1232_v14 = vcombine.high %v4860_v57, %v4877_v1 }
 0x10f   : > { %3399 = vrot.lane.b32.xlu0 %v5031_v27, %s4432_s5  ;;  %3035 = vrot.lane.b32.xlu1 %v5210_v16, %s4424_s23  ;;  %v1216_v20 = vcombine.high %v4875_v2, %v4894_v15  ;;  %v1583_v4 = vcombine.high %v1526_v39, %v1542_v51  ;;  %v1264_v38 = vcombine.high %v4896_v56, %v4912_v22  ;;  %v6860_v15 = vld [vmem:[#allocation32_spill] sm:$0xff] }
 0x110   : > { %v1280_v53 = vcombine.high %v4937_v7, %v4934_v43  ;;  %v1248_v25 = vcombine.high %v4910_v19, %v4925_v47  ;;  %v1312_v57 = vcombine.high %v4943_v40, %v4940_v24  ;;  %v2801_v22 = vcombine.low %v5031_v27, %v5050_v12 }
 0x111   : > { %v5343_v2 = vrot.slane %v1686_v35, %v4531_v23  ;;  %v5346_v19 = vrot.slane %v1718_v45, %v4531_v23  ;;  %v5349_v1 = vrot.slane %v1687_v46, %v4531_v23  ;;  %v5352_v56 = vrot.slane %v1719_v10, %v4531_v23  ;;  %v6854_v45 = vld [vmem:[#allocation34_spill] sm:$0xff]  ;;  %v6855_v10 = vld [vmem:[#allocation33_spill] sm:$0xff] }
 0x112   : > { %v5355_v47 = vrot.slane %v1550_v33, %v4531_v23  ;;  %v5358_v43 = vrot.slane %v1232_v14, %v4495_v11  ;;  %v5361_v7 = vrot.slane %v1216_v20, %v4495_v11  ;;  %v5364_v24 = vrot.slane %v1264_v38, %v4495_v11  ;;  %v6856_v33 = vld [vmem:[#allocation36_spill] sm:$0xff]  ;;  %v6859_v20 = vld [vmem:[#allocation39_spill] sm:$0xff] }
 0x113   : > { %3407 = vrot.lane.b32.xlu0 %v5050_v12, %s4432_s5  ;;  %3403 = vrot.lane.b32.xlu1 %v5054_v32, %s4432_s5  ;;  %6850 = vst [vmem:[#allocation15_spill] sm:$0xff] %v5343_v2  ;;  %6851 = vst [vmem:[#allocation13_spill] sm:$0xff] %v5346_v19  ;;  %v5367_v40 = vrot.slane %v1582_v44, %v4531_v23  ;;  %v5370_v39 = vrot.slane %v1280_v53, %v4531_v23 }
 0x114   : > { %6852 = vst [vmem:[#allocation18_spill] sm:$0xff] %v5355_v47  ;;  %v5373_v51 = vrot.slane %v1248_v25, %v4495_v11  ;;  %v1096_v35 = vcombine.high %v4927_v55, %v4947_v50  ;;  %v1326_v46 = vrot.slane %v1312_v57, %v4531_v23  ;;  %v1080_v14 = vcombine.high %v4945_v49, %v4955_v42  ;;  %v6857_v25 = vld [vmem:[#allocation37_spill] sm:$0xff]  ;;  %v6858_v50 = vld [vmem:[#allocation38_spill] sm:$0xff] }
 0x115   : > { %6853 = vst [vmem:[#allocation16_spill] sm:$0xff] %v5367_v40  ;;  %v1128_v44 = vcombine.high %v4957_v21, %v4970_v62  ;;  %v1112_v38 = vcombine.high %v6855_v10, %v6854_v45  ;;  %v1144_v55 = vcombine.high %v6857_v25, %v6856_v33  ;;  %v1176_v53 = vcombine.high %v6859_v20, %v6858_v50 }
 0x116   : > { %v1344_v30 = vcombine.high %v6861_v8, %v6860_v15  ;;  %v1751_v57 = vcombine.high %v5343_v2, %v5346_v19  ;;  %v1752_v49 = vcombine.low %v5349_v1, %v5352_v56  ;;  %v1615_v42 = vcombine.high %v5355_v47, %v5367_v40  ;;  %v6862_v47 = vld [vmem:[#allocation45_spill] sm:$0xff]  ;;  %v6863_v40 = vld [vmem:[#allocation44_spill] sm:$0xff]  ;;  %v5461_v2 = vpop.permute.xlu1 %1832 }
 0x117   : > { %3415 = vrot.lane.b32.xlu0 %v5080_v52, %s4432_s5  ;;  %3411 = vrot.lane.b32.xlu1 %v5083_v60, %s4432_s5  ;;  %v5401_v21 = vrot.slane %v1551_v59, %v4531_v23  ;;  %v5404_v62 = vrot.slane %v1583_v4, %v4531_v23  ;;  %v1295_v45 = vcombine.low %v5361_v7, %v5358_v43 }
 0x118   : > { %v1327_v10 = vcombine.low %v5373_v51, %v5364_v24  ;;  %v5411_v33 = vrot.slane %v1096_v35, %v4495_v11  ;;  %v5418_v59 = vrot.slane %v1080_v14, %v4495_v11  ;;  %v5421_v4 = vrot.slane %v1128_v44, %v4495_v11 }
 0x119   : > { %v5424_v25 = vrot.slane %v1112_v38, %v4495_v11  ;;  %v1345_v50 = vcombine.low %v5370_v39, %v1326_v46  ;;  %v1158_v35 = vrot.slane %v1144_v55, %v4531_v23  ;;  %v1190_v20 = vrot.slane %v1176_v53, %v4531_v23 }
 0x11a   : > { %v4170_v17 = vpack.i.bf16 %v1751_v57, %v1344_v30  ;;  %v1208_v15 = vcombine.high %v6863_v40, %v6862_v47  ;;  %v2802_v14 = vcombine.high %v5031_v27, %v5050_v12  ;;  %v5434_v8 = vrot.slane %v2801_v22, %v4495_v11 }
 0x11b   : > { %3423 = vrot.lane.b32.xlu0 %v5090_v61, %s4432_s5  ;;  %3419 = vrot.lane.b32.xlu1 %v5109_v3, %s4432_s5  ;;  %v2817_v44 = vcombine.low %v5054_v32, %v5083_v60  ;;  %v6864_v38 = vcombine.low %v5270_v37, %v5266_v29  ;;  %v1753_v27 = vcombine.high %v5349_v1, %v5352_v56  ;;  %v5463_v1 = vpop.permute.xlu0 %1828 }
 0x11c   : > { %v1616_v12 = vcombine.low %v5401_v21, %v5404_v62  ;;  %v6865_v30 = vcombine.low %v5286_v5, %v5283_v41  ;;  %v1303_v53 = vrot.slane %v1295_v45, %v4531_v23  ;;  %v1335_v57 = vrot.slane %v1327_v10, %v4531_v23 }
 0x11d   : > { %v5442_v55 = vrot.slane %v6864_v38, %v4531_v23  ;;  %v1159_v38 = vcombine.low %v5418_v59, %v5411_v33  ;;  %v4180_v56 = vpack.i.bf16 %v1752_v49, %v1345_v50  ;;  %v4175_v19 = vpack.i.bf16 %v1615_v42, %v1208_v15 }
 0x11e   : > { %v1742_v22 = vrot.slane %v6865_v30, %v4531_v23  ;;  %v1346_v47 = vcombine.high %v5370_v39, %v1326_v46  ;;  %v1209_v40 = vcombine.low %v1158_v35, %v1190_v20  ;;  %v5467_v30 = vrot.slane %v2802_v14, %v4495_v11 }
 0x11f   : > { %3397 = vrot.lane.b32.xlu0 %v5127_v34, %s4432_s5  ;;  %3427 = vrot.lane.b32.xlu1 %v5130_v54, %s4432_s5  ;;  %v2818_v45 = vcombine.high %v5054_v32, %v5083_v60  ;;  %v2833_v10 = vcombine.low %v5080_v52, %v5090_v61  ;;  %v6867_v32 = vcombine.low %v5294_v31, %v5291_v18 }
 0x120   : > { %v1754_v15 = vcombine.low %v5442_v55, %v1742_v22  ;;  %v5488_v39 = vrot.slane %v1159_v38, %v4531_v23  ;;  %v4190_v49 = vpack.i.bf16 %v1753_v27, %v1346_v47  ;;  %v4185_v42 = vpack.i.bf16 %v1616_v12, %v1209_v40  ;;  %v5513_v40 = vpop.permute.xlu1 %1840 }
 0x121   : > { %v5485_v60 = vrot.slane %v6867_v32, %v4531_v23  ;;  %v1347_v50 = vcombine.low %v1303_v53, %v1335_v57  ;;  %v1210_v14 = vcombine.high %v1158_v35, %v1190_v20  ;;  %v5503_v38 = vrot.slane %v2833_v10, %v4495_v11  ;;  %v5515_v35 = vpop.permute.xlu0 %1836  ;;  %v6873_v10 = vld [vmem:[#allocation22_spill] sm:$0xff] }
 0x122   : > { %v1328_v47 = vcombine.high %v5373_v51, %v5364_v24  ;;  %v1348_v20 = vcombine.high %v1303_v53, %v1335_v57  ;;  %v6870_v27 = vcombine.high %v5270_v37, %v5266_v29  ;;  %v6872_v57 = vld [vmem:[#allocation20_spill] sm:$0xff]  ;;  %v4109_v32 = vunpack.i.h.bf16 %v6873_v10 }
 0x123   : > { %3405 = vrot.lane.b32.xlu0 %v5149_v13, %s4432_s5  ;;  %3401 = vrot.lane.b32.xlu1 %v5152_v6, %s4432_s5  ;;  %v4200_v24 = vpack.i.bf16 %v1754_v15, %v1347_v50  ;;  %v6877_v50 = vld [vmem:[#allocation54_spill] sm:$0xff] }
 0x124   : > { %v5530_v12 = vrot.slane %v6870_v27, %v4531_v23  ;;  %v5547_v37 = vrot.slane %v1328_v47, %v4531_v23  ;;  %v6879_v27 = vld [vmem:[#allocation7_spill] sm:$0xff] }
 0x127   : > { %3413 = vrot.lane.b32.xlu0 %v5163_v26, %s4432_s5  ;;  %3409 = vrot.lane.b32.xlu1 %v5166_v9, %s4432_s5 }
 0x12b   : > { %3421 = vrot.lane.b32.xlu0 %v5187_v36, %s4432_s5  ;;  %3417 = vrot.lane.b32.xlu1 %v5190_v63, %s4432_s5  ;;  %v2834_v63 = vcombine.high %v5080_v52, %v5090_v61  ;;  %v1617_v52 = vcombine.high %v5401_v21, %v5404_v62  ;;  %v1755_v21 = vcombine.high %v5442_v55, %v1742_v22  ;;  %v6883_v55 = vld [vmem:[#allocation14_spill] sm:$0xff] }
 0x12c   : > { %v1296_v62 = vcombine.high %v5361_v7, %v5358_v43  ;;  %v6871_v22 = vcombine.high %v5286_v5, %v5283_v41  ;;  %v5551_v41 = vpop.permute.xlu1 %1848  ;;  %v5553_v5 = vpop.permute.xlu0 %1844 }
 0x12d   : > { %v4195_v51 = vpack.i.bf16 %v1617_v52, %v1210_v14  ;;  %v4108_v52 = vunpack.i.l.bf16 %v6873_v10  ;;  %v6881_v10 = vld [vmem:[#allocation58_spill] sm:$0xff] }
 0x12e   : > { %v5536_v53 = vrot.slane %v6871_v22, %v4531_v23  ;;  %v5544_v29 = vrot.slane %v1296_v62, %v4531_v23 }
 0x12f   : > { %3425 = vrot.lane.b32.xlu1 %v5210_v16, %s4432_s5  ;;  %4171 = vrot.lane.b32.xlu0 %v4170_v17, %s4426_s25  ;;  %v1191_v17 = vcombine.low %v5424_v25, %v5421_v4  ;;  %v5476_v16 = vrot.slane %v2817_v44, %v4495_v11  ;;  %v5500_v44 = vrot.slane %v2818_v45, %v4495_v11  ;;  %v4103_v45 = vunpack.i.l.bf16 %v6872_v57 }
 0x131   : > { %6866 = vst [vmem:[#allocation19_spill] sm:$0xff] %v5476_v16  ;;  %v5491_v61 = vrot.slane %v1191_v17, %v4531_v23  ;;  %v5506_v17 = vrot.slane %v2834_v63, %v4495_v11 }
 0x133   : > { %4181 = vrot.lane.b32.xlu0 %v4180_v56, %s4427_s26  ;;  %4176 = vrot.lane.b32.xlu1 %v4175_v19, %s4426_s25  ;;  %v6868_v19 = vcombine.low %v5303_v0, %v5306_v28  ;;  %6869 = vst [vmem:[#allocation17_spill] sm:$0xff] %v5506_v17  ;;  %v1211_v43 = vcombine.low %v5488_v39, %v5491_v61  ;;  %v4104_v56 = vunpack.i.h.bf16 %v6872_v57  ;;  %v6880_v57 = vld [vmem:[#allocation59_spill] sm:$0xff] }
 0x134   : > { %v1212_v47 = vcombine.high %v5488_v39, %v5491_v61  ;;  %v6887_v61 = vld [vmem:[#allocation21_spill] sm:$0xff] }
 0x135   : > { %v1606_v46 = vrot.slane %v6868_v19, %v4531_v23  ;;  %v4210_v19 = vpack.i.bf16 %v1755_v21, %v1348_v20  ;;  %v2141_v21 = vcombine.high %v6881_v10, %v6880_v57  ;;  %v6882_v20 = vld [vmem:[#allocation12_spill] sm:$0xff]  ;;  %v6899_v10 = vld [vmem:[#allocation25_spill] sm:$0xff] }
 0x136   : > { %v2531_v63 = vcombine.high %v6883_v55, %v6882_v20  ;;  %v6895_v20 = vld [vmem:[#allocation29_spill] sm:$0xff] }
 0x137   : > { %4191 = vrot.lane.b32.xlu0 %v4190_v49, %s4425_s24  ;;  %4186 = vrot.lane.b32.xlu1 %v4185_v42, %s4427_s26  ;;  %v1618_v7 = vcombine.low %v5485_v60, %v1606_v46  ;;  %v1619_v15 = vcombine.high %v5485_v60, %v1606_v46  ;;  %v6874_v49 = vld [vmem:[#allocation51_spill] sm:$0xff]  ;;  %v6875_v60 = vld [vmem:[#allocation52_spill] sm:$0xff]  ;;  %v6876_v42 = vld [vmem:[#allocation53_spill] sm:$0xff] }
 0x138   : > { %v2077_v46 = vcombine.high %v6875_v60, %v6874_v49  ;;  %v2109_v14 = vcombine.high %v6877_v50, %v6876_v42  ;;  %v6884_v49 = vld [vmem:[#allocation8_spill] sm:$0xff]  ;;  %v6885_v60 = vld [vmem:[#allocation10_spill] sm:$0xff]  ;;  %v4113_v42 = vunpack.i.l.bf16 %v6887_v61  ;;  %v6888_v50 = vld [vmem:[#allocation9_spill] sm:$0xff] }
 0x139   : > { %v4205_v62 = vpack.i.bf16 %v1618_v7, %v1211_v43  ;;  %v6886_v16 = vcombine.low %v6884_v49, %v6885_v60  ;;  %v4114_v7 = vunpack.i.h.bf16 %v6887_v61  ;;  %v1349_v61 = vcombine.low %v5544_v29, %v5547_v37 }
 0x13a   : > { %v5590_v60 = vrot.slane %v2077_v46, %v4531_v23  ;;  %v5595_v39 = vrot.slane %v2109_v14, %v4531_v23 }
 0x13b   : > { %4201 = vrot.lane.b32.xlu0 %v4200_v24, %s4428_s27  ;;  %4196 = vrot.lane.b32.xlu1 %v4195_v51, %s4425_s24  ;;  %v2467_v24 = vcombine.high %v5201_v58, %v5194_v48  ;;  %v6878_v51 = vld [vmem:[#allocation5_spill] sm:$0xff]  ;;  %v605_v43 = vsel %vm604_vm2, %v6886_v16, %v4103_v45  ;;  %v1756_v48 = vcombine.low %v5530_v12, %v5536_v53 }
 0x13c   : > { %v2499_v22 = vcombine.high %v6879_v27, %v6878_v51  ;;  %v6889_v51 = vld [vmem:[#allocation11_spill] sm:$0xff]  ;;  %v607_v16 = vsel %vm606_vm3, %v605_v43, %v4108_v52  ;;  %v4220_v58 = vpack.i.bf16 %v1619_v15, %v1212_v47  ;;  %v4215_v43 = vpack.i.bf16 %v2531_v63, %v2141_v21 }
 0x13d   : > { %v6890_v27 = vcombine.low %v6888_v50, %v6889_v51  ;;  %v6892_v21 = vld [vmem:[#allocation27_spill] sm:$0xff] }
 0x13e   : > { %v5601_v52 = vrot.slane %v2499_v22, %v4531_v23  ;;  %v609_v22 = vsel %vm608_vm4, %v607_v16, %v4113_v42 }
 0x13f   : > { %v618_v49 = vsel %vm604_vm2, %v6890_v27, %v4104_v56  ;;  %4211 = vrot.lane.b32.xlu0 %v4210_v19, %s4429_s28  ;;  %4206 = vrot.lane.b32.xlu1 %v4205_v62, %s4428_s27  ;;  %v5598_v56 = vrot.slane %v2467_v24, %v4531_v23 }
 0x140   : > { %v619_v45 = vsel %vm606_vm3, %v618_v49, %v4109_v32  ;;  %v6891_v32 = vld [vmem:[#allocation23_spill] sm:$0xff]  ;;  %v6893_v49 = vld [vmem:[#allocation28_spill] sm:$0xff] }
 0x141   : > { %v4137_v19 = vpop.permute.xlu1 %4136  ;;  %v4142_v62 = vpop.permute.xlu0 %4141  ;;  %v4119_v50 = vunpack.i.h.bf16 %v6891_v32  ;;  %v620_v14 = vsel %vm608_vm4, %v619_v45, %v4114_v7  ;;  %v4118_v63 = vunpack.i.l.bf16 %v6891_v32  ;;  %v6894_v15 = vcombine.low %v6892_v21, %v6893_v49  ;;  %v6896_v7 = vld [vmem:[#allocation30_spill] sm:$0xff] }
 0x142   : > { %v4139_v46 = vunpack.i.h.bf16 %v4137_v19  ;;  %v4138_v47 = vunpack.i.l.bf16 %v4137_v19  ;;  %v4144_v51 = vunpack.i.h.bf16 %v4142_v62  ;;  %v4143_v27 = vunpack.i.l.bf16 %v4142_v62  ;;  %v6898_v62 = vld [vmem:[#allocation24_spill] sm:$0xff] }
 0x143   : > { %4221 = vrot.lane.b32.xlu0 %v4220_v58, %s4429_s28  ;;  %4216 = vrot.lane.b32.xlu1 %v4215_v43, %s4426_s25  ;;  %v6897_v45 = vcombine.low %v6895_v20, %v6896_v7  ;;  %v4124_v55 = vunpack.i.h.bf16 %v6898_v62  ;;  %v4225_v43 = vpack.i.bf16 %v1756_v48, %v1349_v61  ;;  %v2142_v32 = vcombine.low %v5590_v60, %v5595_v39 }
 0x144   : > { %v1017_v19 = vsel %vm604_vm2, %v6894_v15, %v4138_v47  ;;  %v2532_v42 = vcombine.low %v5598_v56, %v5601_v52  ;;  %v1757_v15 = vcombine.high %v5530_v12, %v5536_v53  ;;  %v621_v20 = vsel %vm610_vm5, %v620_v14, %v4119_v50 }
 0x145   : > { %v1024_v24 = vsel %vm604_vm2, %v6897_v45, %v4139_v46  ;;  %v4147_v58 = vpop.permute.xlu1 %4146  ;;  %v4152_v57 = vpop.permute.xlu0 %4151  ;;  %v1018_v47 = vsel %vm606_vm3, %v1017_v19, %v4143_v27  ;;  %v4123_v48 = vunpack.i.l.bf16 %v6898_v62  ;;  %v4129_v12 = vunpack.i.h.bf16 %v6899_v10  ;;  %v6900_v27 = vld [vmem:[#allocation26_spill] sm:$0xff] }
 0x146   : > { %v4149_v16 = vunpack.i.h.bf16 %v4147_v58  ;;  %v4148_v21 = vunpack.i.l.bf16 %v4147_v58  ;;  %v1025_v46 = vsel %vm606_vm3, %v1024_v24, %v4144_v51  ;;  %v4154_v49 = vunpack.i.h.bf16 %v4152_v57 }
 0x147   : > { %v4153_v7 = vunpack.i.l.bf16 %v4152_v57  ;;  %4226 = vrot.lane.b32.xlu1 %v4225_v43, %s4430_s29  ;;  %v611_v58 = vsel %vm610_vm5, %v609_v22, %v4118_v63  ;;  %v4235_v14 = vpack.i.bf16 %v2532_v42, %v2142_v32  ;;  %v1350_v24 = vcombine.high %v5544_v29, %v5547_v37 }
 0x148   : > { %v1019_v61 = vsel %vm608_vm4, %v1018_v47, %v4148_v21  ;;  %v1026_v45 = vsel %vm608_vm4, %v1025_v46, %v4149_v16  ;;  %v622_v57 = vsel %vm612_vm6, %v621_v20, %v4124_v55  ;;  %v4128_v51 = vunpack.i.l.bf16 %v6899_v10 }
 0x149   : > { %v4157_v53 = vpop.permute.xlu1 %4156  ;;  %v4162_v50 = vpop.permute.xlu0 %4161  ;;  %v4134_v19 = vunpack.i.h.bf16 %v6900_v27  ;;  %v1020_v16 = vsel %vm610_vm5, %v1019_v61, %v4153_v7  ;;  %v1027_v63 = vsel %vm610_vm5, %v1026_v45, %v4154_v49  ;;  %v4133_v32 = vunpack.i.l.bf16 %v6900_v27 }
 0x14a   : > { %v4159_v62 = vunpack.i.h.bf16 %v4157_v53  ;;  %v4158_v43 = vunpack.i.l.bf16 %v4157_v53  ;;  %v4164_v22 = vunpack.i.h.bf16 %v4162_v50  ;;  %v4163_v21 = vunpack.i.l.bf16 %v4162_v50 }
 0x14b   : > { %4236 = vrot.lane.b32.xlu1 %v4235_v14, %s4427_s26  ;;  %v613_v55 = vsel %vm612_vm6, %v611_v58, %v4123_v48  ;;  %v4245_v20 = vpack.i.bf16 %v1757_v15, %v1350_v24  ;;  %v2143_v46 = vcombine.high %v5590_v60, %v5595_v39  ;;  %v2533_v47 = vcombine.high %v5598_v56, %v5601_v52 }
 0x14c   : > { %v1028_v29 = vsel %vm612_vm6, %v1027_v63, %v4159_v62  ;;  %v1021_v37 = vsel %vm612_vm6, %v1020_v16, %v4158_v43  ;;  %v623_v49 = vsel %vm614_vm7, %v622_v57, %v4129_v12  ;;  %v1892_v7 = vcombine.low %v5461_v2, %v5513_v40 }
 0x14d   : > { %v4167_v10 = vpop.permute.xlu1 %4166  ;;  %v5649_v42 = vpop.permute.xlu0 %1852  ;;  %v1876_v48 = vcombine.low %v5463_v1, %v5515_v35  ;;  %v624_v15 = vsel %vm616_vm8, %v623_v49, %v4134_v19  ;;  %v1029_v58 = vsel %vm614_vm7, %v1028_v29, %v4164_v22  ;;  %v615_v39 = vsel %vm614_vm7, %v613_v55, %v4128_v51 }
 0x14e   : > { %v4169_v61 = vunpack.i.h.bf16 %v4167_v10  ;;  %v4168_v45 = vunpack.i.l.bf16 %v4167_v10  ;;  %v1022_v60 = vsel %vm614_vm7, %v1021_v37, %v4163_v21  ;;  %v1908_v56 = vcombine.low %v5553_v5, %v5649_v42 }
 0x14f   : > { %4246 = vrot.lane.b32.xlu1 %v4245_v20, %s4431_s30  ;;  %v617_v12 = vsel %vm616_vm8, %v615_v39, %v4133_v32  ;;  %v2681_v50 = vcombine.low %v5152_v6, %v5166_v9  ;;  %v4255_v57 = vpack.i.bf16 %v2533_v47, %v2143_v46  ;;  %v6901_v19 = vcombine.low %v5109_v3, %v5130_v54 }
 0x150   : > { %v1030_v52 = vsel %vm616_vm8, %v1029_v58, %v4169_v61  ;;  %v1023_v53 = vsel %vm616_vm8, %v1022_v60, %v4168_v45  ;;  %v5683_v43 = vrot.slane %v1892_v7, %v4495_v11  ;;  %v5686_v16 = vrot.slane %v1876_v48, %v4495_v11  ;;  %v6906_v61 = vld [vmem:[#allocation60_spill] sm:$0xff]  ;;  %v6907_v45 = vld [vmem:[#allocation6_spill] sm:$0xff] }
 0x151   : > { %v5672_v14 = vpop.permute.xlu1 %1856  ;;  %v5674_v24 = vpop.permute.xlu0 %2218  ;;  %v4036_v51 = vpack.c.bf16 %v1030_v52, %v624_v15  ;;  %v4038_v27 = vpack.c.bf16 %v1023_v53, %v617_v12  ;;  %v5680_v62 = vrot.slane %v6901_v19, %v4495_v11  ;;  %v6902_v22 = vcombine.high %v5109_v3, %v5130_v54  ;;  %v6912_v19 = vld [vmem:[#allocation35_spill] sm:$0xff]  ;;  %v6928_v54 = vld [vmem:[#allocation4_spill] sm:$0xff]  ;;  %v6929_v48 = vld [vmem:[#allocation2_spill] sm:$0xff] }
 0x152   : > { %v1924_v63 = vcombine.low %v5551_v41, %v5672_v14  ;;  %v2682_v32 = vcombine.high %v5152_v6, %v5166_v9  ;;  %v2697_v29 = vcombine.low %v5163_v26, %v5187_v36  ;;  %v2698_v55 = vcombine.high %v5163_v26, %v5187_v36 }
 0x153   : > { %v5694_v21 = vrot.slane %v6902_v22, %v4495_v11  ;;  %4256 = vrot.lane.b32.xlu1 %v4255_v57, %s4425_s24  ;;  %4037 = vmatprep.subr.bf16.mxu0 %v4036_v51  ;;  %v5704_v37 = vrot.slane %v1908_v56, %v4495_v11  ;;  %v1160_v3 = vcombine.high %v5418_v59, %v5411_v33  ;;  %v6913_v22 = vld [vmem:[#allocation42_spill] sm:$0xff] }
 0x154   : > { %v5707_v10 = vrot.slane %v1924_v63, %v4495_v11  ;;  %4052 = vmatprep.subr.bf16.mxu1 %v4036_v51  ;;  %4039 = vmatpush1.bf16.msra.mxu0 %v4038_v27  ;;  %v6904_v6 = vcombine.low %v5127_v34, %v5149_v13  ;;  %v5720_v26 = vrot.slane %v2681_v50, %v4495_v11 }
 0x155   : > { %6903 = vst [vmem:[#allocation34_spill] sm:$0xff] %v5694_v21  ;;  %4057 = vmatpush1.bf16.msra.mxu1 %v4038_v27  ;;  %v2223_v36 = vpop.permute.xlu1 %2222  ;;  %v2227_v20 = vpop.permute.xlu0 %2226  ;;  %v1192_v46 = vcombine.high %v5424_v25, %v5421_v4  ;;  %v6905_v33 = vcombine.high %v5127_v34, %v5149_v13  ;;  %v1940_v47 = vcombine.low %v5686_v16, %v5683_v43  ;;  %v6911_v27 = vld [vmem:[#allocation41_spill] sm:$0xff]  ;;  %v6918_v4 = vld [vmem:[#allocation48_spill] sm:$0xff] }
 0x156   : > { %v5717_v9 = vrot.slane %v6904_v6, %v4495_v11  ;;  %v1972_v49 = vcombine.low %v5704_v37, %v5707_v10  ;;  %v5741_v25 = vrot.slane %v2682_v32, %v4495_v11  ;;  %v5744_v34 = vrot.slane %v2697_v29, %v4495_v11  ;;  %v6914_v32 = vld [vmem:[#allocation40_spill] sm:$0xff] }
 0x157   : > { %v5728_v59 = vrot.slane %v6905_v33, %v4495_v11  ;;  %v5747_v13 = vrot.slane %v2698_v55, %v4495_v11  ;;  %v2713_v15 = vcombine.low %v6907_v45, %v6906_v61  ;;  %v5755_v39 = vrot.slane %v1160_v3, %v4531_v23 }
 0x158   : > { %v5752_v58 = vrot.slane %v1972_v49, %v4531_v23  ;;  %v6909_v12 = vcombine.high %v5294_v31, %v5291_v18  ;;  %v6910_v50 = vcombine.high %v5303_v0, %v5306_v28  ;;  %v5772_v51 = vrot.slane %v1192_v46, %v4531_v23 }
 0x159   : > { %v2231_v56 = vpop.permute.xlu1 %2230  ;;  %v2235_v52 = vpop.permute.xlu0 %2234  ;;  %v2029_v63 = vcombine.high %v6912_v19, %v6911_v27  ;;  %v2013_v29 = vcombine.high %v6914_v32, %v6913_v22  ;;  %v5779_v55 = vrot.slane %v1940_v47, %v4531_v23  ;;  %v5790_v6 = vrot.slane %v2713_v15, %v4495_v11  ;;  %v6917_v22 = vld [vmem:[#allocation43_spill] sm:$0xff]  ;;  %v6931_v15 = vld [vmem:[#allocation57_spill] sm:$0xff] }
 0x15a   : > { %6908 = vst [vmem:[#allocation33_spill] sm:$0xff] %v5752_v58  ;;  %v5763_v53 = vrot.slane %v6909_v12, %v4531_v23  ;;  %v5769_v57 = vrot.slane %v6910_v50, %v4531_v23  ;;  %v2282_v28 = vcombine.low %v2223_v36, %v2231_v56  ;;  %v1893_v46 = vcombine.high %v5461_v2, %v5513_v40 }
 0x15b   : > { %6915 = vst [vmem:[#allocation36_spill] sm:$0xff] %v5779_v55  ;;  %v1877_v47 = vcombine.high %v5463_v1, %v5515_v35  ;;  %v1925_v49 = vcombine.high %v5551_v41, %v5672_v14  ;;  %v2266_v12 = vcombine.low %v5674_v24, %v2227_v20  ;;  %v5804_v19 = vrot.slane %v2029_v63, %v4495_v11  ;;  %v6916_v35 = vld [vmem:[#allocation47_spill] sm:$0xff]  ;;  %v6919_v63 = vld [vmem:[#allocation46_spill] sm:$0xff] }
 0x15c   : > { %v5807_v2 = vrot.slane %v2013_v29, %v4495_v11  ;;  %v2283_v40 = vcombine.high %v2223_v36, %v2231_v56  ;;  %v2061_v41 = vcombine.high %v6917_v22, %v6916_v35  ;;  %v1909_v14 = vcombine.high %v5553_v5, %v5649_v42 }
 0x15d   : > { %v2239_v50 = vpop.permute.xlu1 %2238  ;;  %v2243_v27 = vpop.permute.xlu0 %2242  ;;  %v2267_v32 = vcombine.high %v5674_v24, %v2227_v20  ;;  %v2290_v33 = vrot.slane %v2282_v28, %v4495_v11  ;;  %v2045_v0 = vcombine.high %v6919_v63, %v6918_v4  ;;  %v5820_v29 = vrot.slane %v1893_v46, %v4495_v11 }
 0x15e   : > { %v2298_v36 = vcombine.low %v2235_v52, %v2243_v27  ;;  %v2299_v56 = vcombine.high %v2235_v52, %v2243_v27  ;;  %v5823_v31 = vrot.slane %v1877_v47, %v4495_v11  ;;  %v5826_v35 = vrot.slane %v1925_v49, %v4495_v11 }
 0x15f   : > { %v1973_v5 = vcombine.high %v5704_v37, %v5707_v10  ;;  %v2274_v42 = vrot.slane %v2266_v12, %v4495_v11  ;;  %v1941_v4 = vcombine.high %v5686_v16, %v5683_v43  ;;  %v5836_v28 = vrot.slane %v2283_v40, %v4495_v11 }
 0x160   : > { %v5839_v47 = vrot.slane %v1909_v14, %v4495_v11  ;;  %v5842_v49 = vrot.slane %v2267_v32, %v4495_v11  ;;  %v2306_v12 = vrot.slane %v2298_v36, %v4495_v11  ;;  %v5846_v27 = vrot.slane %v2299_v56, %v4495_v11 }
 0x161   : > { %v2247_v24 = vpop.permute.xlu1 %2246  ;;  %v5831_v20 = vpop.permute.xlu0 %3009  ;;  %v2330_v37 = vcombine.low %v2274_v42, %v2290_v33  ;;  %v2331_v10 = vcombine.high %v2274_v42, %v2290_v33  ;;  %v5856_v40 = vrot.slane %v2045_v0, %v4495_v11  ;;  %v5859_v22 = vrot.slane %v1973_v5, %v4531_v23  ;;  %v6922_v0 = vld [vmem:[#allocation55_spill] sm:$0xff]  ;;  %v6923_v42 = vld [vmem:[#allocation49_spill] sm:$0xff] }
 0x162   : > { %v2314_v52 = vcombine.low %v2239_v50, %v2247_v24  ;;  %v2315_v46 = vcombine.high %v2239_v50, %v2247_v24  ;;  %6920 = vst [vmem:[#allocation37_spill] sm:$0xff] %v5842_v49  ;;  %v5853_v50 = vrot.slane %v2061_v41, %v4495_v11  ;;  %v1988_v33 = vcombine.low %v5839_v47, %v5826_v35 }
 0x163   : > { %v2346_v63 = vcombine.low %v5842_v49, %v5836_v28  ;;  %v2419_v24 = vcombine.high %v6923_v42, %v6922_v0  ;;  %v5874_v5 = vrot.slane %v1941_v4, %v4531_v23  ;;  %v5882_v18 = vrot.slane %v2331_v10, %v4531_v23  ;;  %v6926_v4 = vld [vmem:[#allocation56_spill] sm:$0xff]  ;;  %v6927_v42 = vld [vmem:[#allocation50_spill] sm:$0xff] }
 0x164   : > { %v2322_v43 = vrot.slane %v2314_v52, %v4495_v11  ;;  %v5850_v16 = vrot.slane %v2315_v46, %v4495_v11  ;;  %v1956_v52 = vcombine.low %v5823_v31, %v5820_v29  ;;  %v5879_v46 = vrot.slane %v2330_v37, %v4531_v23  ;;  %v6930_v37 = vld [vmem:[#allocation3_spill] sm:$0xff] }
 0x165   : > { %v5863_v14 = vpop.permute.xlu1 %3013  ;;  %v5865_v32 = vpop.permute.xlu0 %3017  ;;  %v2403_v60 = vcombine.high %v6927_v42, %v6926_v4  ;;  %v2451_v7 = vcombine.high %v6929_v48, %v6928_v54  ;;  %v2435_v1 = vcombine.high %v6931_v15, %v6930_v37  ;;  %v5900_v10 = vrot.slane %v1988_v33, %v4531_v23 }
 0x166   : > { %6921 = vst [vmem:[#allocation38_spill] sm:$0xff] %v5863_v14  ;;  %v2362_v36 = vcombine.low %v2306_v12, %v2322_v43  ;;  %v2363_v56 = vcombine.high %v2306_v12, %v2322_v43  ;;  %v2378_v41 = vcombine.low %v5846_v27, %v5850_v16  ;;  %6924 = vst [vmem:[#allocation39_spill] sm:$0xff] %v5879_v46 }
 0x167   : > { %v2007_v4 = vcombine.high %v5874_v5, %v5859_v22  ;;  %v2092_v48 = vcombine.low %v5807_v2, %v5804_v19  ;;  %v2433_v15 = vrot.slane %v2419_v24, %v4495_v11  ;;  %v2005_v33 = vcombine.high %v5779_v55, %v5752_v58 }
 0x168   : > { %v5885_v12 = vrot.slane %v2362_v36, %v4531_v23  ;;  %v5888_v43 = vrot.slane %v2363_v56, %v4531_v23  ;;  %v5891_v0 = vrot.slane %v2378_v41, %v4531_v23  ;;  %v5907_v56 = vrot.slane %v2346_v63, %v4531_v23 }
 0x169   : > { %v5902_v36 = vpop.permute.xlu1 %3021  ;;  %v5904_v3 = vpop.permute.xlu0 %3025  ;;  %v5923_v42 = vrot.slane %v1956_v52, %v4531_v23  ;;  %v2417_v17 = vrot.slane %v2403_v60, %v4495_v11  ;;  %v2465_v24 = vrot.slane %v2451_v7, %v4495_v11  ;;  %v2449_v49 = vrot.slane %v2435_v1, %v4495_v11 }
 0x16a   : > { %6925 = vst [vmem:[#allocation20_spill] sm:$0xff] %v5885_v12  ;;  %6932 = vst [vmem:[#allocation22_spill] sm:$0xff] %v5902_v36  ;;  %v2397_v54 = vcombine.high %v5882_v18, %v5888_v43  ;;  %v2395_v63 = vcombine.high %v5879_v46, %v5885_v12  ;;  %v3207_v37 = vcombine.low %v5863_v14, %v5902_v36 }
 0x16b   : > { %6933 = vst [vmem:[#allocation51_spill] sm:$0xff] %v5904_v3  ;;  %v2398_v21 = vcombine.low %v5907_v56, %v5891_v0  ;;  %v2124_v52 = vcombine.low %v5856_v40, %v5853_v50  ;;  %v3191_v60 = vcombine.low %v5831_v20, %v5865_v32  ;;  %v2008_v7 = vcombine.low %v5923_v42, %v5900_v10 }
 0x16c   : > { %v4265_v41 = vpack.i.bf16 %v2397_v54, %v2007_v4  ;;  %v4230_v12 = vpack.i.bf16 %v2395_v63, %v2005_v33  ;;  %v6935_v4 = vcombine.high %v6907_v45, %v6906_v61  ;;  %v2093_v1 = vcombine.high %v5807_v2, %v5804_v19 }
 0x16d   : > { %v5932_v58 = vpop.permute.xlu1 %3029  ;;  %v5934_v55 = vpop.permute.xlu0 %3033  ;;  %v6936_v61 = vcombine.low %v5755_v39, %v5772_v51  ;;  %v6937_v45 = vcombine.low %v5763_v53, %v5769_v57  ;;  %v3215_v19 = vrot.slane %v3207_v37, %v4495_v11  ;;  %v4275_v33 = vpack.i.bf16 %v2398_v21, %v2008_v7 }
 0x16e   : > { %6934 = vst [vmem:[#allocation52_spill] sm:$0xff] %v5934_v55  ;;  %v5942_v54 = vrot.slane %v6935_v4, %v4495_v11  ;;  %4266 = vrot.lane.b32.xlu1 %v4265_v41, %s4425_s24  ;;  %4231 = vrot.lane.b32.xlu0 %v4230_v12, %s4426_s25  ;;  %v1621_v41 = vcombine.high %v5763_v53, %v5769_v57 }
 0x16f   : > { %v4240_v63 = vpack.i.bf16 %v6937_v45, %v6936_v61  ;;  %v5963_v4 = vrot.slane %v2092_v48, %v4531_v23  ;;  %v3223_v2 = vcombine.low %v5904_v3, %v5934_v55  ;;  %v2482_v12 = vcombine.low %v2417_v17, %v2433_v15 }
 0x170   : > { %v2514_v46 = vcombine.low %v2449_v49, %v2465_v24  ;;  %v2396_v61 = vcombine.low %v5882_v18, %v5888_v43  ;;  %v1214_v53 = vcombine.high %v5755_v39, %v5772_v51  ;;  %v2125_v57 = vcombine.high %v5856_v40, %v5853_v50  ;;  %v6938_v39 = vld [vmem:[#allocation19_spill] sm:$0xff] }
 0x171   : > { %v5968_v14 = vpop.permute.xlu1 %3037  ;;  %v5970_v36 = vpop.permute.xlu0 %3007  ;;  %v2132_v48 = vrot.slane %v2124_v52, %v4531_v23  ;;  %v3199_v37 = vrot.slane %v3191_v60, %v4495_v11  ;;  %v2483_v7 = vcombine.high %v2417_v17, %v2433_v15  ;;  %v2515_v45 = vcombine.high %v2449_v49, %v2465_v24 }
 0x172   : > { %v3239_v21 = vcombine.low %v5932_v58, %v5968_v14  ;;  %4276 = vrot.lane.b32.xlu1 %v4275_v33, %s4428_s27  ;;  %4241 = vrot.lane.b32.xlu0 %v4240_v63, %s4430_s29  ;;  %v2006_v18 = vcombine.low %v5874_v5, %v5859_v22  ;;  %v6939_v51 = vcombine.low %v5434_v8, %v6938_v39 }
 0x173   : > { %v3255_v40 = vcombine.low %v3199_v37, %v3215_v19  ;;  %v3231_v43 = vrot.slane %v3223_v2, %v4495_v11  ;;  %v6940_v17 = vcombine.low %v5503_v38, %v5680_v62  ;;  %v2490_v15 = vrot.slane %v2482_v12, %v4531_v23 }
 0x174   : > { %v5990_v50 = vrot.slane %v6939_v51, %v4531_v23  ;;  %v3247_v52 = vrot.slane %v3239_v21, %v4495_v11  ;;  %v2762_v22 = vcombine.high %v5744_v34, %v5790_v6  ;;  %v2522_v5 = vrot.slane %v2514_v46, %v4531_v23 }
 0x175   : > { %v5998_v49 = vrot.slane %v6940_v17, %v4531_v23  ;;  %v6004_v24 = vpop.permute.xlu1 %3011  ;;  %v6006_v60 = vpop.permute.xlu0 %3015  ;;  %v4250_v33 = vpack.i.bf16 %v2396_v61, %v2006_v18  ;;  %v2107_v63 = vrot.slane %v2093_v1, %v4531_v23  ;;  %v2139_v2 = vrot.slane %v2125_v57, %v4531_v23 }
 0x176   : > { %v3287_v21 = vcombine.low %v3231_v43, %v3247_v52  ;;  %v4260_v51 = vpack.i.bf16 %v1621_v41, %v1214_v53  ;;  %v2497_v17 = vrot.slane %v2483_v7, %v4531_v23  ;;  %v2529_v12 = vrot.slane %v2515_v45, %v4531_v23 }
 0x177   : > { %v3288_v3 = vcombine.high %v3231_v43, %v3247_v52  ;;  %4251 = vrot.lane.b32.xlu0 %v4250_v33, %s4427_s26  ;;  %v2144_v46 = vcombine.low %v5963_v4, %v2132_v48  ;;  %v6015_v55 = vrot.slane %v3255_v40, %v4531_v23  ;;  %v2930_v1 = vcombine.high %v5990_v50, %v5998_v49 }
 0x178   : > { %v6018_v61 = vrot.slane %v3287_v21, %v4531_v23  ;;  %v2145_v41 = vcombine.high %v5963_v4, %v2132_v48  ;;  %v3256_v53 = vcombine.high %v3199_v37, %v3215_v19  ;;  %v2534_v45 = vcombine.low %v2490_v15, %v2522_v5 }
 0x179   : > { %v3020_v57 = vpop.permute.xlu1 %3019  ;;  %v6023_v7 = vpop.permute.xlu0 %3023  ;;  %v6941_v18 = vcombine.high %v5434_v8, %v6938_v39  ;;  %v6942_v40 = vcombine.high %v5503_v38, %v5680_v62  ;;  %v2535_v48 = vcombine.high %v2490_v15, %v2522_v5  ;;  %v2146_v37 = vcombine.low %v2107_v63, %v2139_v2 }
 0x17a   : > { %v3320_v19 = vcombine.high %v6015_v55, %v6018_v61  ;;  %v6042_v33 = vrot.slane %v3288_v3, %v4531_v23  ;;  %v2536_v8 = vcombine.low %v2497_v17, %v2529_v12  ;;  %v2147_v39 = vcombine.high %v2107_v63, %v2139_v2 }
 0x17b   : > { %v6029_v43 = vrot.slane %v6941_v18, %v4531_v23  ;;  %v6035_v52 = vrot.slane %v6942_v40, %v4531_v23  ;;  %4261 = vrot.lane.b32.xlu0 %v4260_v51, %s4431_s30  ;;  %v2537_v21 = vcombine.high %v2497_v17, %v2529_v12  ;;  %v2777_v38 = vcombine.low %v5747_v13, %v5942_v54 }
 0x17c   : > { %v3071_v18 = vcombine.low %v6004_v24, %v3020_v57  ;;  %v4285_v40 = vpack.i.bf16 %v3320_v19, %v2930_v1  ;;  %v6051_v15 = vrot.slane %v3256_v53, %v4531_v23  ;;  %v4270_v4 = vpack.i.bf16 %v2534_v45, %v2144_v46 }
 0x17d   : > { %v3028_v5 = vpop.permute.xlu1 %3027  ;;  %v3032_v3 = vpop.permute.xlu0 %3031  ;;  %v2931_v51 = vcombine.low %v6029_v43, %v6035_v52  ;;  %v2932_v63 = vcombine.high %v6029_v43, %v6035_v52  ;;  %v3055_v17 = vcombine.low %v5970_v36, %v6006_v60  ;;  %v4280_v12 = vpack.i.bf16 %v2535_v48, %v2145_v41 }
 0x17e   : > { %4286 = vrot.lane.b32.xlu1 %v4285_v40, %s4426_s25  ;;  %v6943_v1 = vcombine.low %v5467_v30, %v5500_v44  ;;  %v4295_v53 = vpack.i.bf16 %v2536_v8, %v2146_v37  ;;  %v3321_v45 = vcombine.low %v6051_v15, %v6042_v33  ;;  %v4315_v19 = vpack.i.bf16 %v2537_v21, %v2147_v39 }
 0x17f   : > { %4271 = vrot.lane.b32.xlu0 %v4270_v4, %s4428_s27  ;;  %v6944_v62 = vcombine.low %v5717_v9, %v5720_v26  ;;  %v3079_v41 = vrot.slane %v3071_v18, %v4495_v11  ;;  %v3087_v48 = vcombine.low %v6023_v7, %v3032_v3  ;;  %v6945_v40 = vcombine.low %v5744_v34, %v5790_v6 }
 0x180   : > { %v6066_v46 = vrot.slane %v6943_v1, %v4531_v23  ;;  %v6946_v37 = vcombine.high %v5717_v9, %v5720_v26  ;;  %v3072_v39 = vcombine.high %v6004_v24, %v3020_v57  ;;  %v2399_v18 = vcombine.high %v5907_v56, %v5891_v0 }
 0x181   : > { %v6075_v2 = vrot.slane %v6944_v62, %v4531_v23  ;;  %v6083_v4 = vrot.slane %v6945_v40, %v4531_v23  ;;  %v3036_v21 = vpop.permute.xlu1 %3035  ;;  %v6092_v62 = vpop.permute.xlu0 %3399  ;;  %v6097_v1 = vrot.slane %v2762_v22, %v4531_v23  ;;  %v6947_v34 = vcombine.low %v5728_v59, %v5741_v25 }
 0x182   : > { %v6089_v8 = vrot.slane %v6946_v37, %v4531_v23  ;;  %v3063_v9 = vrot.slane %v3055_v17, %v4495_v11  ;;  %v3088_v26 = vcombine.high %v6023_v7, %v3032_v3  ;;  %v3103_v24 = vcombine.low %v3028_v5, %v3036_v21  ;;  %4296 = vrot.lane.b32.xlu1 %v4295_v53, %s4430_s29 }
 0x183   : > { %v6103_v6 = vrot.slane %v6947_v34, %v4531_v23  ;;  %v3104_v57 = vcombine.high %v3028_v5, %v3036_v21  ;;  %v3056_v0 = vcombine.high %v5970_v36, %v6006_v60  ;;  %4281 = vrot.lane.b32.xlu0 %v4280_v12, %s4429_s28  ;;  %v2009_v56 = vcombine.high %v5923_v42, %v5900_v10 }
 0x184   : > { %v4305_v22 = vpack.i.bf16 %v3321_v45, %v2931_v51  ;;  %v6114_v40 = vrot.slane %v2777_v38, %v4531_v23  ;;  %v3119_v37 = vcombine.low %v3063_v9, %v3079_v41  ;;  %v3095_v17 = vrot.slane %v3087_v48, %v4495_v11 }
 0x185   : > { %v3111_v7 = vrot.slane %v3103_v24, %v4495_v11  ;;  %v6119_v5 = vrot.slane %v3104_v57, %v4495_v11  ;;  %v1989_v36 = vcombine.high %v5839_v47, %v5826_v35  ;;  %v2379_v60 = vcombine.high %v5846_v27, %v5850_v16  ;;  %v6128_v42 = vpop.permute.xlu1 %3403  ;;  %v6130_v38 = vpop.permute.xlu0 %3407  ;;  %v6948_v35 = vld [vmem:[#allocation37_spill] sm:$0xff] }
 0x186   : > { %v6126_v10 = vrot.slane %v3072_v39, %v4495_v11  ;;  %v4290_v3 = vpack.i.bf16 %v2399_v18, %v2009_v56  ;;  %v3120_v51 = vcombine.high %v3063_v9, %v3079_v41  ;;  %v6133_v12 = vrot.slane %v3088_v26, %v4495_v11  ;;  %4306 = vrot.lane.b32.xlu1 %v4305_v22, %s4427_s26  ;;  %v6949_v22 = vld [vmem:[#allocation22_spill] sm:$0xff] }
 0x187   : > { %v3151_v53 = vcombine.low %v3095_v17, %v3111_v7  ;;  %v3152_v45 = vcombine.high %v3095_v17, %v3111_v7  ;;  %v2347_v47 = vcombine.high %v6948_v35, %v5836_v28  ;;  %v6139_v27 = vrot.slane %v3056_v0, %v4495_v11  ;;  %v6951_v7 = vld [vmem:[#allocation52_spill] sm:$0xff] }
 0x188   : > { %4291 = vrot.lane.b32.xlu0 %v4290_v3, %s4429_s28  ;;  %v3322_v16 = vcombine.high %v6051_v15, %v6042_v33  ;;  %v2794_v41 = vcombine.high %v6075_v2, %v6083_v4  ;;  %v6147_v48 = vrot.slane %v3119_v37, %v4531_v23  ;;  %v3167_v28 = vcombine.low %v6133_v12, %v6119_v5  ;;  %v6950_v37 = vld [vmem:[#allocation38_spill] sm:$0xff] }
 0x189   : > { %v6150_v39 = vrot.slane %v3151_v53, %v4531_v23  ;;  %v6153_v21 = vrot.slane %v3152_v45, %v4531_v23  ;;  %v6158_v18 = vrot.slane %v1989_v36, %v4531_v23  ;;  %v6161_v33 = vrot.slane %v2379_v60, %v4531_v23  ;;  %v6165_v34 = vpop.permute.xlu1 %3411  ;;  %v6167_v9 = vpop.permute.xlu0 %3415  ;;  %v6952_v36 = vld [vmem:[#allocation51_spill] sm:$0xff] }
 0x18a   : > { %v3240_v15 = vcombine.high %v5932_v58, %v5968_v14  ;;  %v2796_v26 = vcombine.high %v6089_v8, %v6097_v1  ;;  %v3134_v24 = vrot.slane %v3120_v51, %v4531_v23  ;;  %v3135_v57 = vcombine.low %v6139_v27, %v6126_v10  ;;  %4316 = vrot.lane.b32.xlu1 %v4315_v19, %s4431_s30 }
 0x18b   : > { %v3183_v0 = vcombine.low %v6147_v48, %v6150_v39  ;;  %v3184_v58 = vcombine.high %v6147_v48, %v6150_v39  ;;  %v6180_v14 = vrot.slane %v2347_v47, %v4531_v23  ;;  %v3192_v56 = vcombine.high %v5831_v20, %v5865_v32 }
 0x18c   : > { %v3208_v17 = vcombine.high %v6950_v37, %v6949_v22  ;;  %v3224_v60 = vcombine.high %v6952_v36, %v6951_v7  ;;  %v6189_v3 = vrot.slane %v3167_v28, %v4531_v23  ;;  %v4325_v19 = vpack.i.bf16 %v3322_v16, %v2932_v63 }
 0x18d   : > { %v4300_v51 = vpack.i.bf16 %v3184_v58, %v2794_v41  ;;  %v3186_v53 = vcombine.high %v3134_v24, %v6153_v21  ;;  %v6953_v20 = vcombine.high %v5823_v31, %v5820_v29  ;;  %v6202_v45 = vrot.slane %v3240_v15, %v4495_v11  ;;  %v6204_v35 = vpop.permute.xlu1 %3419  ;;  %v6206_v47 = vpop.permute.xlu0 %3423 }
 0x18e   : > { %v2400_v43 = vcombine.low %v6180_v14, %v6161_v33  ;;  %v2795_v52 = vcombine.low %v6089_v8, %v6097_v1  ;;  %v3143_v63 = vrot.slane %v3135_v57, %v4531_v23  ;;  %v3581_v31 = vcombine.low %v6092_v62, %v6130_v38  ;;  %4326 = vrot.lane.b32.xlu1 %v4325_v19, %s4425_s24 }
 0x18f   : > { %v6199_v32 = vrot.slane %v6953_v20, %v4531_v23  ;;  %v3597_v29 = vcombine.low %v6128_v42, %v6165_v34  ;;  %v2797_v16 = vcombine.low %v6103_v6, %v6114_v40  ;;  %v6221_v41 = vrot.slane %v3208_v17, %v4495_v11  ;;  %4301 = vrot.lane.b32.xlu0 %v4300_v51, %s4426_s25 }
 0x190   : > { %v3238_v28 = vrot.slane %v3224_v60, %v4495_v11  ;;  %v3613_v8 = vcombine.low %v6167_v9, %v6206_v47  ;;  %v6230_v15 = vrot.slane %v3192_v56, %v4495_v11  ;;  %v3168_v57 = vcombine.high %v6133_v12, %v6119_v5 }
 0x191   : > { %v2010_v1 = vcombine.low %v6199_v32, %v6158_v18  ;;  %v4335_v58 = vpack.i.bf16 %v3186_v53, %v2796_v26  ;;  %v3187_v22 = vcombine.low %v3143_v63, %v6189_v3  ;;  %v3136_v17 = vcombine.high %v6139_v27, %v6126_v10  ;;  %v6238_v7 = vpop.permute.xlu1 %3427  ;;  %v6240_v36 = vpop.permute.xlu0 %3397 }
 0x192   : > { %v3303_v37 = vcombine.low %v3238_v28, %v6202_v45  ;;  %v3185_v19 = vcombine.low %v3134_v24, %v6153_v21  ;;  %v6244_v56 = vrot.slane %v3581_v31, %v4495_v11  ;;  %v6247_v5 = vrot.slane %v3597_v29, %v4495_v11 }
 0x193   : > { %v4310_v60 = vpack.i.bf16 %v2400_v43, %v2010_v1  ;;  %v6250_v12 = vrot.slane %v3613_v8, %v4495_v11  ;;  %v3629_v26 = vcombine.low %v6204_v35, %v6238_v7  ;;  %4336 = vrot.lane.b32.xlu1 %v4335_v58, %s4425_s24  ;;  %v3271_v10 = vcombine.low %v6230_v15, %v6221_v41  ;;  %v6957_v8 = vld [vmem:[#allocation34_spill] sm:$0xff] }
 0x194   : > { %v2798_v27 = vcombine.high %v6103_v6, %v6114_v40  ;;  %v6954_v21 = vcombine.high %v5728_v59, %v5741_v25  ;;  %v6955_v51 = vcombine.high %v5747_v13, %v5942_v54  ;;  %v6273_v20 = vrot.slane %v3168_v57, %v4531_v23  ;;  %v6956_v54 = vld [vmem:[#allocation17_spill] sm:$0xff] }
 0x195   : > { %4311 = vrot.lane.b32.xlu0 %v4310_v60, %s4430_s29  ;;  %v6276_v43 = vrot.slane %v3629_v26, %v4495_v11  ;;  %v4345_v31 = vpack.i.bf16 %v3187_v22, %v2797_v16  ;;  %v3188_v6 = vcombine.high %v3143_v63, %v6189_v3  ;;  %v3311_v40 = vrot.slane %v3303_v37, %v4531_v23  ;;  %v6280_v59 = vpop.permute.xlu1 %3401  ;;  %v6282_v25 = vpop.permute.xlu0 %3405 }
 0x196   : > { %v6264_v24 = vrot.slane %v6954_v21, %v4531_v23  ;;  %v6270_v53 = vrot.slane %v6955_v51, %v4531_v23  ;;  %v4320_v29 = vpack.i.bf16 %v3185_v19, %v2795_v52  ;;  %v2401_v13 = vcombine.high %v6180_v14, %v6161_v33 }
 0x197   : > { %v6958_v1 = vcombine.low %v6956_v54, %v6957_v8  ;;  %v2882_v16 = vcombine.high %v5467_v30, %v5500_v44  ;;  %v6293_v3 = vrot.slane %v3136_v17, %v4531_v23  ;;  %v3645_v63 = vcombine.low %v6244_v56, %v6247_v5  ;;  %4346 = vrot.lane.b32.xlu1 %v4345_v31, %s4428_s27 }
 0x198   : > { %v3677_v52 = vcombine.low %v6250_v12, %v6276_v43  ;;  %v2914_v33 = vcombine.high %v6956_v54, %v6957_v8  ;;  %v3279_v14 = vrot.slane %v3271_v10, %v4531_v23  ;;  %v2011_v30 = vcombine.high %v6199_v32, %v6158_v18 }
 0x199   : > { %v2921_v57 = vrot.slane %v6958_v1, %v4531_v23  ;;  %4321 = vrot.lane.b32.xlu0 %v4320_v29, %s4427_s26  ;;  %v2799_v44 = vcombine.low %v6264_v24, %v6270_v53  ;;  %v3304_v58 = vcombine.high %v3238_v28, %v6202_v45  ;;  %v4355_v37 = vpack.i.bf16 %v3188_v6, %v2798_v27  ;;  %v6314_v60 = vpop.permute.xlu1 %3409  ;;  %v6316_v19 = vpop.permute.xlu0 %3413 }
 0x19a   : > { %v6310_v22 = vrot.slane %v3677_v52, %v4531_v23  ;;  %v3189_v17 = vcombine.low %v6293_v3, %v6273_v20  ;;  %v4330_v26 = vpack.i.bf16 %v2401_v13, %v2011_v30  ;;  %v3323_v18 = vcombine.low %v3279_v14, %v3311_v40 }
 0x19b   : > { %v2933_v10 = vcombine.low %v6066_v46, %v2921_v57  ;;  %v6320_v32 = vrot.slane %v3645_v63, %v4531_v23  ;;  %4356 = vrot.lane.b32.xlu1 %v4355_v37, %s4429_s28  ;;  %v3272_v45 = vcombine.high %v6230_v15, %v6221_v41  ;;  %v2896_v28 = vrot.slane %v2882_v16, %v4531_v23 }
 0x19c   : > { %v2928_v27 = vrot.slane %v2914_v33, %v4531_v23  ;;  %v3318_v21 = vrot.slane %v3304_v58, %v4531_v23  ;;  %v4365_v51 = vpack.i.bf16 %v3189_v17, %v2799_v44  ;;  %v2934_v31 = vcombine.high %v6066_v46, %v2921_v57 }
 0x19d   : > { %4331 = vrot.lane.b32.xlu0 %v4330_v26, %s4431_s30  ;;  %v3709_v6 = vcombine.low %v6320_v32, %v6310_v22  ;;  %v3445_v29 = vcombine.low %v6240_v36, %v6282_v25  ;;  %v3461_v41 = vcombine.low %v6280_v59, %v6314_v60  ;;  %v3418_v15 = vpop.permute.xlu1 %3417  ;;  %v3422_v13 = vpop.permute.xlu0 %3421  ;;  %v4340_v54 = vpack.i.bf16 %v3323_v18, %v2933_v10 }
 0x19e   : > { %v3324_v8 = vcombine.high %v3279_v14, %v3311_v40  ;;  %v3286_v1 = vrot.slane %v3272_v45, %v4531_v23  ;;  %v3477_v16 = vcombine.low %v6316_v19, %v3422_v13  ;;  %v3710_v46 = vcombine.high %v6320_v32, %v6310_v22 }
 0x19f   : > { %4366 = vrot.lane.b32.xlu1 %v4365_v51, %s4430_s29  ;;  %v2935_v57 = vcombine.low %v2896_v28, %v2928_v27  ;;  %v3453_v63 = vrot.slane %v3445_v29, %v4495_v11  ;;  %v3469_v52 = vrot.slane %v3461_v41, %v4495_v11  ;;  %v2936_v58 = vcombine.high %v2896_v28, %v2928_v27 }
 0x1a0   : > { %v4350_v30 = vpack.i.bf16 %v3324_v8, %v2934_v31  ;;  %v3325_v44 = vcombine.low %v3286_v1, %v3318_v21  ;;  %v3485_v40 = vrot.slane %v3477_v16, %v4495_v11  ;;  %v3326_v37 = vcombine.high %v3286_v1, %v3318_v21 }
 0x1a1   : > { %4341 = vrot.lane.b32.xlu0 %v4340_v54, %s4428_s27  ;;  %v3426_v33 = vpop.permute.xlu1 %3425  ;;  %v6346_v17 = vpop.permute.xlu0 %4171  ;;  %v3509_v10 = vcombine.low %v3453_v63, %v3469_v52  ;;  %v2800_v51 = vcombine.high %v6264_v24, %v6270_v53  ;;  %v3614_v31 = vcombine.high %v6167_v9, %v6206_v47  ;;  %v3190_v28 = vcombine.high %v6293_v3, %v6273_v20 }
 0x1a2   : > { %v3493_v14 = vcombine.low %v3418_v15, %v3426_v33  ;;  %v4360_v45 = vpack.i.bf16 %v3325_v44, %v2935_v57  ;;  %v4370_v41 = vpack.i.bf16 %v3326_v37, %v2936_v58  ;;  %v3478_v27 = vcombine.high %v6316_v19, %v3422_v13  ;;  %v6959_v19 = vld [vmem:[#allocation44_spill] sm:$0xff] }
 0x1a3   : > { %3746 = vrot.lane.b32.xlu1 %v3710_v46, %s4426_s25  ;;  %v3494_v21 = vcombine.high %v3418_v15, %v3426_v33  ;;  %v3630_v1 = vcombine.high %v6204_v35, %v6238_v7  ;;  %v3678_v24 = vcombine.high %v6250_v12, %v6276_v43  ;;  %v3446_v9 = vcombine.high %v6240_v36, %v6282_v25  ;;  %v6960_v15 = vld [vmem:[#allocation45_spill] sm:$0xff] }
 0x1a4   : > { %v3501_v26 = vrot.slane %v3493_v14, %v4495_v11  ;;  %v3462_v53 = vcombine.high %v6280_v59, %v6314_v60  ;;  %v3510_v20 = vcombine.high %v3453_v63, %v3469_v52  ;;  %v6373_v3 = vrot.slane %v3509_v10, %v4531_v23 }
 0x1a5   : > { %4351 = vrot.lane.b32.xlu0 %v4350_v30, %s4429_s28  ;;  %v6350_v18 = vpop.permute.xlu1 %4176  ;;  %v6961_v13 = vcombine.low %v6959_v19, %v6960_v15  ;;  %v6381_v7 = vpop.permute.xlu0 %4181  ;;  %v3582_v36 = vcombine.high %v6092_v62, %v6130_v38  ;;  %v3598_v43 = vcombine.high %v6128_v42, %v6165_v34  ;;  %v3646_v59 = vcombine.high %v6244_v56, %v6247_v5  ;;  %v6962_v15 = vld [vmem:[#allocation58_spill] sm:$0xff] }
 0x1a6   : > { %v3541_v29 = vcombine.low %v3485_v40, %v3501_v26  ;;  %v3542_v54 = vcombine.high %v3485_v40, %v3501_v26  ;;  %v4178_v8 = vunpack.i.l.bf16 %v6350_v18  ;;  %v3492_v25 = vrot.slane %v3478_v27, %v4495_v11 }
 0x1a7   : > { %v3508_v60 = vrot.slane %v3494_v21, %v4495_v11  ;;  %v3628_v57 = vrot.slane %v3614_v31, %v4495_v11  ;;  %v3644_v62 = vrot.slane %v3630_v1, %v4495_v11  ;;  %v3692_v42 = vrot.slane %v3678_v24, %v4531_v23 }
 0x1a8   : > { %v6368_v47 = vrot.slane %v3541_v29, %v4531_v23  ;;  %v6379_v35 = vsel %vm604_vm2, %v6961_v13, %v4178_v8  ;;  %v3556_v16 = vrot.slane %v3542_v54, %v4531_v23  ;;  %v4375_v38 = vpack.i.bf16 %v3190_v28, %v2800_v51  ;;  %v6963_v13 = vld [vmem:[#allocation59_spill] sm:$0xff] }
 0x1a9   : > { %4361 = vrot.lane.b32.xlu0 %v4360_v45, %s4430_s29  ;;  %v6383_v12 = vpop.permute.xlu1 %4186  ;;  %v3460_v34 = vrot.slane %v3446_v9, %v4495_v11  ;;  %v3476_v56 = vrot.slane %v3462_v53, %v4495_v11  ;;  %v3524_v5 = vrot.slane %v3510_v20, %v4531_v23  ;;  %v3596_v33 = vrot.slane %v3582_v36, %v4495_v11  ;;  %v6411_v14 = vpop.permute.xlu0 %4191 }
 0x1aa   : > { %v3574_v46 = vcombine.high %v6373_v3, %v6368_v47  ;;  %v3573_v52 = vcombine.low %v6373_v3, %v6368_v47  ;;  %v3612_v30 = vrot.slane %v3598_v43, %v4495_v11  ;;  %v3660_v44 = vrot.slane %v3646_v59, %v4531_v23  ;;  %v6965_v59 = vld [vmem:[#allocation14_spill] sm:$0xff] }
 0x1ab   : > { %v3557_v40 = vcombine.low %v3492_v25, %v3508_v60  ;;  %v3575_v58 = vcombine.low %v3524_v5, %v3556_v16  ;;  %v3693_v37 = vcombine.low %v3628_v57, %v3644_v62  ;;  %v3525_v26 = vcombine.low %v3460_v34, %v3476_v56 }
 0x1ac   : > { %3718 = vrot.lane.b32.xlu1 %v3574_v46, %s4426_s25  ;;  %v3711_v45 = vcombine.low %v3660_v44, %v3692_v42  ;;  %v3661_v51 = vcombine.low %v3596_v33, %v3612_v30  ;;  %v3576_v11 = vcombine.high %v3524_v5, %v3556_v16  ;;  %v3712_v21 = vcombine.high %v3660_v44, %v3692_v42  ;;  %v6966_v16 = vld [vmem:[#allocation12_spill] sm:$0xff]  ;;  %v6969_v42 = vld [vmem:[#allocation15_spill] sm:$0xff] }
 0x1ad   : > { %4371 = vrot.lane.b32.xlu0 %v4370_v41, %s4431_s30  ;;  %v6404_v63 = vpop.permute.xlu1 %4196  ;;  %v3565_v31 = vrot.slane %v3557_v40, %v4531_v23  ;;  %v3701_v29 = vrot.slane %v3693_v37, %v4531_v23  ;;  %v3533_v41 = vrot.slane %v3525_v26, %v4531_v23  ;;  %v4202_v28 = vpop.permute.xlu0 %4201  ;;  %v3662_v54 = vcombine.high %v3596_v33, %v3612_v30 }
 0x1ae   : > { %v3694_v8 = vcombine.high %v3628_v57, %v3644_v62  ;;  %v3669_v9 = vrot.slane %v3661_v51, %v4531_v23  ;;  %v3558_v53 = vcombine.high %v3492_v25, %v3508_v60  ;;  %v3526_v19 = vcombine.high %v3460_v34, %v3476_v56  ;;  %v6968_v62 = vld [vmem:[#allocation13_spill] sm:$0xff] }
 0x1af   : > { %v3577_v20 = vcombine.low %v3533_v41, %v3565_v31  ;;  %v6964_v36 = vcombine.low %v6962_v15, %v6963_v13  ;;  %v6967_v46 = vcombine.low %v6965_v59, %v6966_v16  ;;  %v4173_v25 = vunpack.i.l.bf16 %v6346_v17 }
 0x1b0   : > { %3722 = vrot.lane.b32.xlu1 %v3575_v58, %s4427_s26  ;;  %v3713_v34 = vcombine.low %v3669_v9, %v3701_v29  ;;  %v3676_v56 = vrot.slane %v3662_v54, %v4531_v23  ;;  %v3708_v5 = vrot.slane %v3694_v8, %v4531_v23  ;;  %v4174_v33 = vunpack.i.h.bf16 %v6346_v17 }
 0x1b1   : > { %4376 = vrot.lane.b32.xlu0 %v4375_v38, %s4431_s30  ;;  %v6415_v10 = vpop.permute.xlu1 %4206  ;;  %v1750_v38 = vcombine.low %v6969_v42, %v6968_v62  ;;  %v4183_v30 = vunpack.i.l.bf16 %v6381_v7  ;;  %v3572_v44 = vrot.slane %v3558_v53, %v4531_v23  ;;  %v4184_v40 = vunpack.i.h.bf16 %v6381_v7  ;;  %v4212_v58 = vpop.permute.xlu0 %4211 }
 0x1b2   : > { %v3578_v37 = vcombine.high %v3533_v41, %v3565_v31  ;;  %v3714_v26 = vcombine.high %v3669_v9, %v3701_v29  ;;  %v4194_v51 = vunpack.i.h.bf16 %v6411_v14  ;;  %v4204_v8 = vunpack.i.h.bf16 %v4202_v28 }
 0x1b3   : > { %v1821_v31 = vsel %vm604_vm2, %v1750_v38, %v4174_v33  ;;  %v4214_v29 = vunpack.i.h.bf16 %v4212_v58  ;;  %v4213_v41 = vunpack.i.l.bf16 %v4212_v58  ;;  %v3715_v16 = vcombine.low %v3676_v56, %v3708_v5 }
 0x1b4   : > { %3726 = vrot.lane.b32.xlu1 %v3576_v11, %s4425_s24  ;;  %v4193_v11 = vunpack.i.l.bf16 %v6411_v14  ;;  %v4434_v14 = vmov 0   ;;  %v1822_v9 = vsel %vm606_vm3, %v1821_v31, %v4184_v40  ;;  %v3716_v40 = vcombine.high %v3676_v56, %v3708_v5  ;;  %v6973_v5 = vld [vmem:[#allocation16_spill] sm:$0xff] }
 0x1b5   : > { %3750 = vrot.lane.b32.xlu0 %v3711_v45, %s4427_s26  ;;  %v4217_v27 = vpop.permute.xlu1 %4216  ;;  %v3540_v45 = vrot.slane %v3526_v19, %v4531_v23  ;;  %4381 = vset.pattern.permute.xlu1 %v4434_v14  ;;  %v1823_v15 = vsel %vm608_vm4, %v1822_v9, %v4194_v51  ;;  %v4209_v31 = vunpack.i.h.bf16 %v6415_v10 }
 0x1b6   : > { %v4219_v1 = vunpack.i.h.bf16 %v4217_v27  ;;  %v4218_v24 = vunpack.i.l.bf16 %v4217_v27  ;;  %v6970_v27 = vld [vmem:[#allocation31_spill] sm:$0xff]  ;;  %4380 = vset.pattern.permute.xlu0 %v4434_v14 }
 0x1b8   : > { %v6428_v43 = vsel %vm604_vm2, %v6964_v36, %v4218_v24  ;;  %v6434_v57 = vsel %vm604_vm2, %v6967_v46, %v4219_v1  ;;  %3730 = vrot.lane.b32.xlu1 %v3577_v20, %s4428_s27  ;;  %v4203_v1 = vunpack.i.l.bf16 %v4202_v28  ;;  %v4433_v24 = vmov 0.0  }
 0x1b9   : > { %3754 = vrot.lane.b32.xlu0 %v3712_v21, %s4425_s24  ;;  %v4227_v60 = vpop.permute.xlu1 %4226  ;;  %v6971_v21 = vld [vmem:[#allocation32_spill] sm:$0xff]  ;;  %3872 = vmatprep.mubr.f32.mxu0 %v4433_v24  ;;  %v3579_v28 = vcombine.low %v3540_v45, %v3572_v44  ;;  %v1824_v36 = vsel %vm610_vm5, %v1823_v15, %v4204_v8  ;;  %v4188_v8 = vunpack.i.l.bf16 %v6383_v12  ;;  %s250_s24 = scalar_lea.vmem %s6664_s4, %s4034_s14 }
 0x1ba   : > { %v6972_v17 = vcombine.low %v6970_v27, %v6971_v21  ;;  %3878 = vmatprep.mubr.f32.mxu1 %v4433_v24  ;;  %v4229_v53 = vunpack.i.h.bf16 %v4227_v60  ;;  %v4228_v20 = vunpack.i.l.bf16 %v4227_v60  ;;  %v1825_v62 = vsel %vm612_vm6, %v1824_v36, %v4214_v29 }
 0x1bb   : > { %v4179_v21 = vunpack.i.h.bf16 %v6350_v18  ;;  %v4198_v24 = vunpack.i.l.bf16 %v6404_v63  ;;  %v1408_v9 = vsel %vm606_vm3, %v6379_v35, %v4188_v8 }
 0x1bc   : > { %v1414_v54 = vsel %vm604_vm2, %v6972_v17, %v4173_v25  ;;  %3734 = vrot.lane.b32.xlu1 %v3578_v37, %s4429_s28  ;;  %v1826_v60 = vsel %vm614_vm7, %v1825_v62, %v4229_v53  ;;  %v3790_v37 = vld [vmem:[%s6662_s2 + $0x8] sm:$0xff] }
 0x1bd   : > { %3758 = vrot.lane.b32.xlu0 %v3713_v34, %s4428_s27  ;;  %v6455_v7 = vpop.permute.xlu1 %4236  ;;  %v1415_v23 = vsel %vm606_vm3, %v1414_v54, %v4183_v30  ;;  %v3580_v34 = vcombine.high %v3540_v45, %v3572_v44  ;;  %v3789_v44 = vld [vmem:[%s6662_s2] sm:$0xff]  ;;  %v4189_v54 = vunpack.i.h.bf16 %v6383_v12 }
 0x1be   : > { %v1416_v19 = vsel %vm608_vm4, %v1415_v23, %v4193_v11  ;;  %v6974_v11 = vld [vmem:[#allocation18_spill] sm:$0xff]  ;;  %v4208_v23 = vunpack.i.l.bf16 %v6415_v10 }
 0x1bf   : > { %v1417_v13 = vsel %vm610_vm5, %v1416_v19, %v4203_v1  ;;  %v1614_v27 = vcombine.low %v6974_v11, %v6973_v5  ;;  %v4199_v1 = vunpack.i.h.bf16 %v6404_v63 }
 0x1c0   : > { %3738 = vrot.lane.b32.xlu1 %v3579_v28, %s4430_s29  ;;  %v1418_v46 = vsel %vm612_vm6, %v1417_v13, %v4213_v41  ;;  %v1409_v28 = vsel %vm608_vm4, %v1408_v9, %v4198_v24 }
 0x1c1   : > { %3762 = vrot.lane.b32.xlu0 %v3714_v26, %s4429_s28  ;;  %v4247_v59 = vpop.permute.xlu1 %4246  ;;  %v1419_v25 = vsel %vm614_vm7, %v1418_v46, %v4228_v20  ;;  %v4222_v26 = vpop.permute.xlu0 %4221  ;;  %v1814_v41 = vsel %vm604_vm2, %v1614_v27, %v4179_v21  ;;  %v1410_v10 = vsel %vm610_vm5, %v1409_v28, %v4208_v23 }
 0x1c2   : > { %v4249_v42 = vunpack.i.h.bf16 %v4247_v59  ;;  %v4248_v38 = vunpack.i.l.bf16 %v4247_v59  ;;  %v4224_v14 = vunpack.i.h.bf16 %v4222_v26  ;;  %v4223_v18 = vunpack.i.l.bf16 %v4222_v26 }
 0x1c3   : > { %v1815_v53 = vsel %vm606_vm3, %v1814_v41, %v4189_v54 }
 0x1c4   : > { %v1420_v33 = vsel %vm616_vm8, %v1419_v25, %v4248_v38  ;;  %v1827_v30 = vsel %vm616_vm8, %v1826_v60, %v4249_v42  ;;  %3742 = vrot.lane.b32.xlu1 %v3580_v34, %s4431_s30  ;;  %v1816_v63 = vsel %vm608_vm4, %v1815_v53, %v4199_v1  ;;  %v1411_v59 = vsel %vm612_vm6, %v1410_v10, %v4223_v18 }
 0x1c5   : > { %3766 = vrot.lane.b32.xlu0 %v3715_v16, %s4430_s29  ;;  %v4040_v58 = vpack.c.bf16 %v1827_v30, %v1420_v33  ;;  %v4257_v51 = vpop.permute.xlu1 %4256  ;;  %v1817_v15 = vsel %vm610_vm5, %v1816_v63, %v4209_v31  ;;  %v4239_v33 = vunpack.i.h.bf16 %v6455_v7  ;;  %v4238_v30 = vunpack.i.l.bf16 %v6455_v7 }
 0x1c6   : > { %v1818_v36 = vsel %vm612_vm6, %v1817_v15, %v4224_v14 }
 0x1c7   : > { %4041 = vmatprep.subr.bf16.mxu0 %v4040_v58  ;;  %4053 = vmatprep.subr.bf16.mxu1 %v4040_v58  ;;  %v4259_v58 = vunpack.i.h.bf16 %v4257_v51  ;;  %v2212_v27 = vsel %vm606_vm3, %v6428_v43, %v4238_v30  ;;  %v2602_v21 = vsel %vm606_vm3, %v6434_v57, %v4239_v33 }
 0x1c8   : > { %3798 = vperm.xlu1 %4381, %v3790_v37   ;;  %v4258_v37 = vunpack.i.l.bf16 %v4257_v51 }
 0x1c9   : > { %3770 = vrot.lane.b32.xlu0 %v3716_v40, %s4431_s30  ;;  %v2603_v7 = vsel %vm608_vm4, %v2602_v21, %v4259_v58 }
 0x1ca   : > { %v2213_v8 = vsel %vm608_vm4, %v2212_v27, %v4258_v37 }
 0x1cd   : > { %3793 = vperm.xlu0 %4380, %v3789_v44  }
 0x1e0   : > { %v6481_v45 = vpop.permute.xlu0 %4231  ;;  %v6486_v17 = vpop.permute.xlu1 %4266 }
 0x1e1   : > { %v4234_v15 = vunpack.i.h.bf16 %v6481_v45  ;;  %v4269_v58 = vunpack.i.h.bf16 %v6486_v17 }
 0x1e4   : > { %v4242_v56 = vpop.permute.xlu0 %4241  ;;  %v6502_v19 = vpop.permute.xlu1 %4276 }
 0x1e5   : > { %v4244_v12 = vunpack.i.h.bf16 %v4242_v56  ;;  %v4243_v20 = vunpack.i.l.bf16 %v4242_v56  ;;  %v4279_v27 = vunpack.i.h.bf16 %v6502_v19  ;;  %v4278_v21 = vunpack.i.l.bf16 %v6502_v19 }
 0x1e7   : > { %v1412_v46 = vsel %vm614_vm7, %v1411_v59, %v4243_v20  ;;  %v1819_v62 = vsel %vm614_vm7, %v1818_v36, %v4244_v12 }
 0x1e9   : > { %v6494_v29 = vpop.permute.xlu0 %4251 }
 0x1ea   : > { %v4254_v36 = vunpack.i.h.bf16 %v6494_v29  ;;  %v4253_v59 = vunpack.i.l.bf16 %v6494_v29  ;;  %v4268_v29 = vunpack.i.l.bf16 %v6486_v17 }
 0x1ed   : > { %v4262_v13 = vpop.permute.xlu0 %4261 }
 0x1ee   : > { %v4264_v35 = vunpack.i.h.bf16 %v4262_v13  ;;  %v4263_v16 = vunpack.i.l.bf16 %v4262_v13  ;;  %v4233_v13 = vunpack.i.l.bf16 %v6481_v45 }
 0x1f0   : > { %v6510_v42 = vpop.permute.xlu1 %4286  ;;  %v1413_v38 = vsel %vm616_vm8, %v1412_v46, %v4263_v16  ;;  %v1820_v25 = vsel %vm616_vm8, %v1819_v62, %v4264_v35  ;;  %v6975_v46 = vld [vmem:[#allocation39_spill] sm:$0xff]  ;;  %v6976_v62 = vld [vmem:[#allocation20_spill] sm:$0xff] }
 0x1f1   : > { %v4272_v60 = vpop.permute.xlu0 %4271  ;;  %v4042_v34 = vpack.c.bf16 %v1820_v25, %v1413_v38  ;;  %v6977_v38 = vcombine.low %v6975_v46, %v6976_v62 }
 0x1f2   : > { %v4274_v26 = vunpack.i.h.bf16 %v4272_v60  ;;  %v4273_v56 = vunpack.i.l.bf16 %v4272_v60  ;;  %v6978_v60 = vld [vmem:[#allocation36_spill] sm:$0xff] }
 0x1f3   : > { %4043 = vmatpush1.bf16.msra.mxu0 %v4042_v34  ;;  %4058 = vmatpush1.bf16.msra.mxu1 %v4042_v34  ;;  %v2594_v25 = vsel %vm604_vm2, %v6977_v38, %v4234_v15  ;;  %v6979_v34 = vld [vmem:[#allocation33_spill] sm:$0xff] }
 0x1f4   : > { %v4297_v40 = vpop.permute.xlu1 %4296  ;;  %v2604_v1 = vsel %vm610_vm5, %v2603_v7, %v4274_v26  ;;  %v2214_v51 = vsel %vm610_vm5, %v2213_v8, %v4273_v56  ;;  %v6980_v33 = vcombine.low %v6978_v60, %v6979_v34 }
 0x1f5   : > { %v4282_v44 = vpop.permute.xlu0 %4281  ;;  %v4299_v24 = vunpack.i.h.bf16 %v4297_v40  ;;  %v4298_v31 = vunpack.i.l.bf16 %v4297_v40  ;;  %v2595_v40 = vsel %vm606_vm3, %v2594_v25, %v4254_v36  ;;  %v4288_v36 = vunpack.i.l.bf16 %v6510_v42 }
 0x1f6   : > { %v4284_v5 = vunpack.i.h.bf16 %v4282_v44  ;;  %v4283_v11 = vunpack.i.l.bf16 %v4282_v44  ;;  %v2204_v30 = vsel %vm604_vm2, %v6980_v33, %v4233_v13  ;;  %v2596_v56 = vsel %vm608_vm4, %v2595_v40, %v4269_v58 }
 0x1f7   : > { %v2205_v45 = vsel %vm606_vm3, %v2204_v30, %v4253_v59  ;;  %v4289_v13 = vunpack.i.h.bf16 %v6510_v42 }
 0x1f8   : > { %v6520_v54 = vpop.permute.xlu1 %4306  ;;  %v2215_v23 = vsel %vm612_vm6, %v2214_v51, %v4283_v11  ;;  %v2605_v41 = vsel %vm612_vm6, %v2604_v1, %v4284_v5  ;;  %v2206_v26 = vsel %vm608_vm4, %v2205_v45, %v4268_v29  ;;  %v2597_v51 = vsel %vm610_vm5, %v2596_v56, %v4279_v27 }
 0x1f9   : > { %v2216_v9 = vsel %vm614_vm7, %v2215_v23, %v4298_v31  ;;  %v2606_v53 = vsel %vm614_vm7, %v2605_v41, %v4299_v24  ;;  %v2207_v1 = vsel %vm610_vm5, %v2206_v26, %v4278_v21  ;;  %v4309_v46 = vunpack.i.h.bf16 %v6520_v54 }
 0x1fa   : > { %v4292_v14 = vpop.permute.xlu0 %4291  ;;  %v4308_v62 = vunpack.i.l.bf16 %v6520_v54 }
 0x1fb   : > { %v4294_v5 = vunpack.i.h.bf16 %v4292_v14  ;;  %v4293_v11 = vunpack.i.l.bf16 %v4292_v14 }
 0x1fc   : > { %v4317_v43 = vpop.permute.xlu1 %4316 }
 0x1fd   : > { %v4319_v18 = vunpack.i.h.bf16 %v4317_v43  ;;  %v4318_v57 = vunpack.i.l.bf16 %v4317_v43  ;;  %v2208_v24 = vsel %vm612_vm6, %v2207_v1, %v4293_v11  ;;  %v2598_v31 = vsel %vm612_vm6, %v2597_v51, %v4294_v5 }
 0x1ff   : > { %v2217_v12 = vsel %vm616_vm8, %v2216_v9, %v4318_v57  ;;  %v2607_v20 = vsel %vm616_vm8, %v2606_v53, %v4319_v18 }
 0x200   : > { %v6532_v28 = vpop.permute.xlu1 %4326  ;;  %v4044_v63 = vpack.c.bf16 %v2607_v20, %v2217_v12  ;;  %v2929_v12 = vcombine.low %v5990_v50, %v5998_v49  ;;  %v2793_v20 = vcombine.low %v6075_v2, %v6083_v4  ;;  %v6981_v4 = vcombine.low %v6015_v55, %v6018_v61 }
 0x201   : > { %v4302_v10 = vpop.permute.xlu0 %4301  ;;  %v4329_v60 = vunpack.i.h.bf16 %v6532_v28  ;;  %v4328_v34 = vunpack.i.l.bf16 %v6532_v28 }
 0x202   : > { %4045 = vmatprep.subr.bf16.mxu0 %v4044_v63  ;;  %4054 = vmatprep.subr.bf16.mxu1 %v4044_v63  ;;  %v4304_v63 = vunpack.i.h.bf16 %v4302_v10  ;;  %v4303_v15 = vunpack.i.l.bf16 %v4302_v10  ;;  %v3000_v2 = vsel %vm604_vm2, %v2929_v12, %v4288_v36  ;;  %v3390_v42 = vsel %vm604_vm2, %v6981_v4, %v4289_v13 }
 0x203   : > { %v3391_v33 = vsel %vm606_vm3, %v3390_v42, %v4309_v46 }
 0x204   : > { %v3383_v50 = vsel %vm604_vm2, %v3183_v0, %v4304_v63  ;;  %v2993_v49 = vsel %vm604_vm2, %v2793_v20, %v4303_v15  ;;  %v3001_v0 = vsel %vm606_vm3, %v3000_v2, %v4308_v62  ;;  %v3392_v11 = vsel %vm608_vm4, %v3391_v33, %v4329_v60 }
 0x205   : > { %v6538_v35 = vpop.permute.xlu1 %4336  ;;  %v3002_v5 = vsel %vm608_vm4, %v3001_v0, %v4328_v34 }
 0x206   : > { %v4339_v48 = vunpack.i.h.bf16 %v6538_v35  ;;  %v4338_v39 = vunpack.i.l.bf16 %v6538_v35 }
 0x207   : > { %v4312_v16 = vpop.permute.xlu0 %4311 }
 0x208   : > { %v4314_v8 = vunpack.i.h.bf16 %v4312_v16  ;;  %v4313_v7 = vunpack.i.l.bf16 %v4312_v16 }
 0x209   : > { %v6552_v37 = vpop.permute.xlu1 %4346 }
 0x20a   : > { %v2209_v43 = vsel %vm614_vm7, %v2208_v24, %v4313_v7  ;;  %v2599_v14 = vsel %vm614_vm7, %v2598_v31, %v4314_v8  ;;  %v4348_v28 = vunpack.i.l.bf16 %v6552_v37 }
 0x20b   : > { %v4322_v44 = vpop.permute.xlu0 %4321 }
 0x20c   : > { %v4324_v59 = vunpack.i.h.bf16 %v4322_v44  ;;  %v4323_v16 = vunpack.i.l.bf16 %v4322_v44  ;;  %v4349_v44 = vunpack.i.h.bf16 %v6552_v37 }
 0x20d   : > { %v6564_v18 = vpop.permute.xlu1 %4356 }
 0x20e   : > { %v2994_v10 = vsel %vm606_vm3, %v2993_v49, %v4323_v16  ;;  %v3384_v54 = vsel %vm606_vm3, %v3383_v50, %v4324_v59  ;;  %v4359_v27 = vunpack.i.h.bf16 %v6564_v18  ;;  %v4358_v21 = vunpack.i.l.bf16 %v6564_v18 }
 0x20f   : > { %v4332_v17 = vpop.permute.xlu0 %4331  ;;  %v2995_v45 = vsel %vm608_vm4, %v2994_v10, %v4338_v39  ;;  %v3385_v40 = vsel %vm608_vm4, %v3384_v54, %v4339_v48 }
 0x210   : > { %v4334_v23 = vunpack.i.h.bf16 %v4332_v17  ;;  %v4333_v41 = vunpack.i.l.bf16 %v4332_v17  ;;  %v2996_v8 = vsel %vm610_vm5, %v2995_v45, %v4348_v28  ;;  %v3386_v7 = vsel %vm610_vm5, %v3385_v40, %v4349_v44  ;;  %v3787_v40 = vld [vmem:[%s6661_s1] sm:$0xff] }
 0x211   : > { %v4367_v38 = vpop.permute.xlu1 %4366  ;;  %v2997_v20 = vsel %vm612_vm6, %v2996_v8, %v4358_v21  ;;  %v3387_v63 = vsel %vm612_vm6, %v3386_v7, %v4359_v27 }
 0x212   : > { %v2210_v19 = vsel %vm616_vm8, %v2209_v43, %v4333_v41  ;;  %v2600_v57 = vsel %vm616_vm8, %v2599_v14, %v4334_v23  ;;  %v4369_v41 = vunpack.i.h.bf16 %v4367_v38  ;;  %v4368_v43 = vunpack.i.l.bf16 %v4367_v38 }
 0x213   : > { %v4342_v9 = vpop.permute.xlu0 %4341  ;;  %v4046_v53 = vpack.c.bf16 %v2600_v57, %v2210_v19 }
 0x214   : > { %v4344_v30 = vunpack.i.h.bf16 %v4342_v9  ;;  %v4343_v55 = vunpack.i.l.bf16 %v4342_v9  ;;  %v2998_v36 = vsel %vm614_vm7, %v2997_v20, %v4368_v43  ;;  %v3388_v59 = vsel %vm614_vm7, %v3387_v63, %v4369_v41 }
 0x215   : > { %4047 = vmatpush1.bf16.msra.mxu0 %v4046_v53  ;;  %4059 = vmatpush1.bf16.msra.mxu1 %v4046_v53  ;;  %v3747_v26 = vpop.permute.xlu1 %3746 }
 0x216   : > { %v3393_v1 = vsel %vm610_vm5, %v3392_v11, %v4344_v30  ;;  %v3003_v51 = vsel %vm610_vm5, %v3002_v5, %v4343_v55  ;;  %v3780_v60 = vsel %vm604_vm2, %v3709_v6, %v3747_v26 }
 0x217   : > { %v4352_v25 = vpop.permute.xlu0 %4351 }
 0x218   : > { %v4354_v58 = vunpack.i.h.bf16 %v4352_v25  ;;  %v4353_v29 = vunpack.i.l.bf16 %v4352_v25 }
 0x21a   : > { %v3004_v17 = vsel %vm612_vm6, %v3003_v51, %v4353_v29  ;;  %v3394_v24 = vsel %vm612_vm6, %v3393_v1, %v4354_v58  ;;  %v3788_v58 = vld [vmem:[%s6661_s1 + $0x8] sm:$0xff] }
 0x21b   : > { %v4362_v61 = vpop.permute.xlu0 %4361 }
 0x21c   : > { %v4364_v56 = vunpack.i.h.bf16 %v4362_v61  ;;  %v4363_v35 = vunpack.i.l.bf16 %v4362_v61 }
 0x21e   : > { %v3005_v14 = vsel %vm614_vm7, %v3004_v17, %v4363_v35  ;;  %v3395_v18 = vsel %vm614_vm7, %v3394_v24, %v4364_v56  ;;  %v3719_v19 = vpop.permute.xlu1 %3718 }
 0x21f   : > { %v4372_v37 = vpop.permute.xlu0 %4371  ;;  %v3773_v34 = vsel %vm604_vm2, %v3573_v52, %v3719_v19 }
 0x220   : > { %v4374_v31 = vunpack.i.h.bf16 %v4372_v37  ;;  %v4373_v23 = vunpack.i.l.bf16 %v4372_v37 }
 0x222   : > { %v3006_v57 = vsel %vm616_vm8, %v3005_v14, %v4373_v23  ;;  %v3396_v9 = vsel %vm616_vm8, %v3395_v18, %v4374_v31  ;;  %v3723_v16 = vpop.permute.xlu1 %3722 }
 0x223   : > { %v4377_v53 = vpop.permute.xlu0 %4376  ;;  %v4048_v12 = vpack.c.bf16 %v3396_v9, %v3006_v57  ;;  %v3774_v0 = vsel %vm606_vm3, %v3773_v34, %v3723_v16 }
 0x224   : > { %v4379_v15 = vunpack.i.h.bf16 %v4377_v53  ;;  %v4378_v13 = vunpack.i.l.bf16 %v4377_v53 }
 0x225   : > { %4049 = vmatprep.subr.bf16.mxu0 %v4048_v12  ;;  %4055 = vmatprep.subr.bf16.mxu1 %v4048_v12 }
 0x226   : > { %v2999_v46 = vsel %vm616_vm8, %v2998_v36, %v4378_v13  ;;  %v3389_v62 = vsel %vm616_vm8, %v3388_v59, %v4379_v15  ;;  %v3727_v50 = vpop.permute.xlu1 %3726 }
 0x227   : > { %v3751_v38 = vpop.permute.xlu0 %3750  ;;  %v4050_v25 = vpack.c.bf16 %v3389_v62, %v2999_v46  ;;  %v3775_v30 = vsel %vm608_vm4, %v3774_v0, %v3727_v50 }
 0x228   : > { %v3781_v48 = vsel %vm606_vm3, %v3780_v60, %v3751_v38 }
 0x229   : > { %4051 = vmatpush1.bf16.msra.mxu0 %v4050_v25  ;;  %4060 = vmatpush1.bf16.msra.mxu1 %v4050_v25 }
 0x22a   : > { %v3731_v2 = vpop.permute.xlu1 %3730 }
 0x22b   : > { %v3755_v49 = vpop.permute.xlu0 %3754  ;;  %v3776_v22 = vsel %vm610_vm5, %v3775_v30, %v3731_v2 }
 0x22c   : > { %v3782_v33 = vsel %vm608_vm4, %v3781_v48, %v3755_v49 }
 0x22e   : > { %v3735_v42 = vpop.permute.xlu1 %3734 }
 0x22f   : > { %v3759_v4 = vpop.permute.xlu0 %3758  ;;  %v3777_v47 = vsel %vm612_vm6, %v3776_v22, %v3735_v42 }
 0x230   : > { %v3783_v55 = vsel %vm610_vm5, %v3782_v33, %v3759_v4 }
 0x232   : > { %v3739_v54 = vpop.permute.xlu1 %3738 }
 0x233   : > { %v3763_v10 = vpop.permute.xlu0 %3762  ;;  %v3778_v61 = vsel %vm614_vm7, %v3777_v47, %v3739_v54 }
 0x234   : > { %v3784_v32 = vsel %vm612_vm6, %v3783_v55, %v3763_v10 }
 0x236   : > { %v3743_v6 = vpop.permute.xlu1 %3742 }
 0x237   : > { %v3767_v39 = vpop.permute.xlu0 %3766  ;;  %v3779_v29 = vsel %vm616_vm8, %v3778_v61, %v3743_v6 }
 0x238   : > { %v3785_v3 = vsel %vm614_vm7, %v3784_v32, %v3767_v39 }
 0x23b   : > { %v3771_v52 = vpop.permute.xlu0 %3770 }
 0x23c   : > { %v3786_v45 = vsel %vm616_vm8, %v3785_v3, %v3771_v52 }
 0x23d   : > { %3824 = vmatprep.subr.mxu0 %v3786_v45  ;;  %4056 = vmatprep.subr.mxu1 %v3786_v45 }
 0x23e   : > { %3825 = vmatpush1.msra.mxu0 %v3779_v29  ;;  %4061 = vmatpush1.msra.mxu1 %v3779_v29 }
 0x23f   : > { %4030 = vmatmul.mubr.msk.f32.vlgmr.msra.gmra.mrb[0].mxu0 %vm3801_vm9, %v3787_v40  ;;  %4031 = vmatmul.mubr.msk.f32.vlgmr.msra.gmra.mrb[0].mxu1 %vm3801_vm9, %v3788_v58 }
 0x247   : > { %v3799_v44 = vpop.permute.xlu1 %3798 }
 0x24c   : > { %v3794_v28 = vpop.permute.xlu0 %3793 }
 0x312   : > { %v3874_v26 = vpop.f32.mrb[0].mxu0  ;;  %v3880_v56 = vpop.f32.mrb[0].mxu1 }
 0x313   : > { %v3875_v35 = vadd.f32 %v3874_v26, %v3794_v28  ;;  %v3881_v5 = vadd.f32 %v3880_v56, %v3799_v44  ;;  %v3876_v11 = vpop.f32.mrb[1].mxu0  ;;  %v3882_v27 = vpop.f32.mrb[1].mxu1 }
 0x314   : > { %v3877_v21 = vadd.f32 %v3876_v11, %v3794_v28  ;;  %v3883_v8 = vadd.f32 %v3882_v27, %v3799_v44 }
 0x315   : > { %3885 = vst [vmem:[%s240_s21] sm:$0xff] %v3875_v35  ;;  %3887 = vst [vmem:[%s250_s24] sm:$0xff] %v3881_v5 }
 0x316   : > { %3886 = vst [vmem:[%s240_s21 + $0x8] sm:$0xff] %v3877_v21  ;;  %3888 = vst [vmem:[%s250_s24 + $0x8] sm:$0xff] %v3883_v8 }
 0x317 PF: > { %s15_s17 = sadd.s32 1, %s4420_s17   ;;  %s6982_s15 = smov %s4416_s16 }
 0x318   : > { %p12_p5 = scmp.ge.s32.totalorder %s15_s17, 4   ;;  %s6983_s16 = smov %s6985_s18 }
 0x31a   :  { %14 = sbr.rel (!%p12_p5) target bundleno = 2 (0x2), region = 74 }

</bundles_post_ra>
